<compile_context>
chip_gen: v7x
topology: tpu7x:2x2x1
jax: 0.10.0
libtpu: 0.0.40
codegen_flags: <defaults>
</compile_context>

<pallas_src>
import functools
import math
import numpy as np
import jax
import jax.numpy as jnp
from jax.experimental import pallas as pl
from jax.experimental.pallas import tpu as pltpu

_LANE = 128


def _round_up(v, m):
    return ((v + m - 1) // m) * m


def _vmem_capacity_bytes():
    try:
        info = pltpu.get_tpu_info()
        for attr in ("vmem_capacity_bytes", "vmem_bytes", "vmem_size_bytes"):
            v = getattr(info, attr, None)
            if v:
                return int(v)
    except Exception:
        pass
    return 64 << 20          # conservative fallback (v7x per-TensorCore VMEM)


def _memory_plan():
    """Generation-specific knobs (v7x: 64 MiB VMEM/TC; v5e/v6e: 128 MiB)."""
    vmem = _vmem_capacity_bytes()
    if vmem <= (80 << 20):                                   # v7x-class
        return dict(phys=vmem, tile=2048,
                    mono_budget=40 << 20, mono_cap=56 << 20)
    return dict(phys=vmem, tile=1024,                        # v5e / v6e
                mono_budget=88 << 20, mono_cap=112 << 20)


# ----------------------------------------------------------------------------
# Kernel 0 (checks only): the `self.lin` MLP as a standalone tiled kernel
# ----------------------------------------------------------------------------
def _mlp_kernel(x_ref, w1_ref, b1_ref, w2_ref, b2_ref, o_ref):
    x = x_ref[...]
    h = jnp.dot(x, w1_ref[...], preferred_element_type=jnp.float32) + b1_ref[...]
    h = jnp.maximum(h, 0.0)                        # args.pool_act == 'relu'
    o = jnp.dot(h, w2_ref[...], preferred_element_type=jnp.float32) + b2_ref[...]
    o_ref[...] = o.astype(o_ref.dtype)


def mlp_pallas(x, w1, b1, w2, b2, tm=2048):
    n, c = x.shape
    tm_eff = min(tm, _round_up(n, 8))
    n_pad = _round_up(n, tm_eff)
    x_p = jnp.pad(x, ((0, n_pad - n), (0, 0)))
    out = pl.pallas_call(
        _mlp_kernel,
        out_shape=jax.ShapeDtypeStruct((n_pad, c), jnp.float32),
        grid=(n_pad // tm_eff,),
        in_specs=[
            pl.BlockSpec((tm_eff, c), lambda i: (i, 0)),
            pl.BlockSpec((c, c), lambda i: (0, 0)),
            pl.BlockSpec((1, c), lambda i: (0, 0)),
            pl.BlockSpec((c, c), lambda i: (0, 0)),
            pl.BlockSpec((1, c), lambda i: (0, 0)),
        ],
        out_specs=pl.BlockSpec((tm_eff, c), lambda i: (i, 0)),
        compiler_params=pltpu.CompilerParams(dimension_semantics=("parallel",)),
    )(x_p, w1, b1[None, :], w2, b2[None, :])
    return out[:n]


# ----------------------------------------------------------------------------
# Kernel 1: fused  MLP  ->  APPNP (K=8, alpha=0.2)  ->  TopK score / gating
#   h0      = Linear(ReLU(Linear(x)))
#   h_{k+1} = (1-a) * A_hat @ h_k + a * h_0
#   score   = tanh(h_K @ (w / ||w||))     (PyG SelectTopK with tanh act)
#   gated   = h_K * score                 (TopKPooling multiplier == 1)
# Monolithic variant: A_hat fully VMEM-resident (loaded from HBM once).
# ----------------------------------------------------------------------------
def _hpool_core_kernel(adj_ref, x_ref, w1_ref, b1_ref, w2_ref, b2_ref, wt_ref,
                       out_ref, score_ref, *, alpha, K, compute_dtype):
    # --- MLP prologue (tiny K=N=32 matmuls, free under the A DMA) ---
    x = x_ref[...]
    h1 = jnp.maximum(
        jnp.dot(x, w1_ref[...], preferred_element_type=jnp.float32) + b1_ref[...],
        0.0)
    h0 = jnp.dot(h1, w2_ref[...], preferred_element_type=jnp.float32) + b2_ref[...]
    # --- APPNP power iteration ---
    adj = adj_ref[...]                     # compute_dtype (bf16 by default)
    ah0 = alpha * h0                       # hoisted out of the K loop
    beta = 1.0 - alpha
    h = h0
    for _ in range(K):                     # static unrolled loop, K = 8
        h = beta * jnp.dot(adj, h.astype(compute_dtype),
                           preferred_element_type=jnp.float32) + ah0
    # Score via elementwise multiply + lane reduction (no N=1 MXU matmul).
    gate = jnp.tanh(jnp.sum(h * wt_ref[...], axis=-1, keepdims=True))
    out_ref[...] = (h * gate).astype(out_ref.dtype)
    score_ref[...] = gate.astype(score_ref.dtype)


# Tiled variant: grid = (K, NI, NJ); A_hat streamed tile-by-tile from HBM,
# h kept resident in VMEM scratch (re-streams A K times — used only when the
# monolithic A does not fit the generation's VMEM budget).
def _hpool_core_tiled_kernel(a_ref, x_ref, w1_ref, b1_ref, w2_ref, b2_ref, wt_ref,
                             out_ref, score_ref,
                             h0_s, hk_cd, hn_f32, acc,
                             *, alpha, K, tr, tc, compute_dtype):
    k = pl.program_id(0)
    i = pl.program_id(1)
    j = pl.program_id(2)
    ni = pl.num_programs(1)
    nj = pl.num_programs(2)

    @pl.when((k == 0) & (i == 0) & (j == 0))
    def _():
        # Fused MLP prologue -> h0 (f32) and the compute-dtype matmul copy.
        x = x_ref[...]
        h1 = jnp.maximum(
            jnp.dot(x, w1_ref[...], preferred_element_type=jnp.float32)
            + b1_ref[...], 0.0)
        h0 = (jnp.dot(h1, w2_ref[...], preferred_element_type=jnp.float32)
              + b2_ref[...])
        h0_s[...] = h0
        hk_cd[...] = h0.astype(compute_dtype)

    @pl.when(j == 0)
    def _():
        acc[...] = jnp.zeros_like(acc)

    col = pl.multiple_of(j * tc, tc)
    acc[...] += jnp.dot(a_ref[...], hk_cd[pl.ds(col, tc), :],
                        preferred_element_type=jnp.float32)

    @pl.when(j == nj - 1)
    def _():
        row = pl.multiple_of(i * tr, tr)
        h_new = (1.0 - alpha) * acc[...] + alpha * h0_s[pl.ds(row, tr), :]
        hn_f32[pl.ds(row, tr), :] = h_new
        # Always write valid data so every HBM block writeback is defined; the
        # k == K-1 pass is the last writer per block (k is the outermost axis)
        # and therefore what survives in HBM.
        gate = jnp.tanh(jnp.sum(h_new * wt_ref[...], axis=-1, keepdims=True))
        out_ref[...] = (h_new * gate).astype(out_ref.dtype)
        score_ref[...] = gate.astype(score_ref.dtype)

        # Advance h_k -> h_{k+1}: one full cast pass per power iteration
        # (replaces per-(i,j)-tile casts and the separate VMEM copy); skipped
        # on the final k.
        @pl.when((i == ni - 1) & (k != K - 1))
        def _():
            hk_cd[...] = hn_f32[...].astype(compute_dtype)


def hpool_core_pallas(a_hat, x, w1, b1, w2, b2, topk_w, *,
                      alpha=0.2, K=8, compute_dtype=jnp.bfloat16,
                      tile=None, force_tiled=False):
    """Fused MLP + dense APPNP + TopK gating.  Returns (gated [n,c], score [n])."""
    n, c = x.shape
    plan = _memory_plan()
    itemsize = int(jnp.dtype(compute_dtype).itemsize)
    n128 = _round_up(n, _LANE)
    use_tiled = force_tiled or (n128 * n128 * itemsize > plan["mono_budget"])
    if tile is None:
        tile = plan["tile"]

    if use_tiled:
        t = min(_round_up(tile, _LANE), n128)
        n_pad = _round_up(n, t)
    else:
        t = None
        n_pad = n128

    # Pad A directly in compute dtype (no f32 n_pad^2 intermediate).  Padded
    # rows/cols of A are zero, so real rows of h are never contaminated by the
    # (nonzero, bias-only) padded rows of the fused-MLP h0; padded output rows
    # are sliced off below.
    a_p = jnp.zeros((n_pad, n_pad), compute_dtype).at[:n, :n].set(
        a_hat.astype(compute_dtype))
    x_p = jnp.zeros((n_pad, c), jnp.float32).at[:n, :].set(x.astype(jnp.float32))
    # bf16 A_hat halves HBM/VMEM traffic and raises MXU throughput; f32
    # accumulation is kept.  Pass compute_dtype=jnp.float32 if TopK ordering
    # on near-tied scores must be bit-faithful to the f32 reference.
    w_row = (topk_w / jnp.linalg.norm(topk_w)).reshape(1, c).astype(jnp.float32)
    w1f = w1.astype(jnp.float32)
    w2f = w2.astype(jnp.float32)
    b1r = b1.reshape(1, c).astype(jnp.float32)
    b2r = b2.reshape(1, c).astype(jnp.float32)

    out_shape = (jax.ShapeDtypeStruct((n_pad, c), jnp.float32),
                 jax.ShapeDtypeStruct((n_pad, 1), jnp.float32))

    if not use_tiled:
        footprint = (n_pad * n_pad * itemsize          # resident A
                     + 16 * n_pad * c * 4              # live h copies (unrolled K)
                     + 4 * n_pad * c * 4               # x / h0 / outputs
                     + (8 << 20))                      # compiler headroom
        vmem_limit = int(max(32 << 20, min(footprint, plan["mono_cap"])))
        gated, score = pl.pallas_call(
            functools.partial(_hpool_core_kernel, alpha=alpha, K=K,
                              compute_dtype=compute_dtype),
            out_shape=out_shape,
            in_specs=[pl.BlockSpec(memory_space=pltpu.MemorySpace.VMEM)] * 7,
            out_specs=(pl.BlockSpec(memory_space=pltpu.MemorySpace.VMEM),
                       pl.BlockSpec(memory_space=pltpu.MemorySpace.VMEM)),
            compiler_params=pltpu.CompilerParams(vmem_limit_bytes=vmem_limit),
        )(a_p, x_p, w1f, b1r, w2f, b2r, w_row)
    else:
        ni = n_pad // t
        footprint = (2 * t * t * itemsize              # A double buffer
                     + 2 * n_pad * c * 4               # x (resident input)
                     + 2 * n_pad * c * 4               # h0_s + hn_f32 scratch
                     + n_pad * c * itemsize            # hk_cd scratch
                     + 4 * t * c * 4 + 2 * t * 4       # acc + out/score buffers
                     + (6 << 20))
        vmem_limit = int(max(32 << 20,
                             min(footprint, plan["phys"] - (2 << 20))))
        gated, score = pl.pallas_call(
            functools.partial(_hpool_core_tiled_kernel, alpha=alpha, K=K,
                              tr=t, tc=t, compute_dtype=compute_dtype),
            out_shape=out_shape,
            grid=(K, ni, ni),
            in_specs=[
                pl.BlockSpec((t, t), lambda k, i, j: (i, j)),
                pl.BlockSpec((n_pad, c), lambda k, i, j: (0, 0)),
                pl.BlockSpec((c, c), lambda k, i, j: (0, 0)),
                pl.BlockSpec((1, c), lambda k, i, j: (0, 0)),
                pl.BlockSpec((c, c), lambda k, i, j: (0, 0)),
                pl.BlockSpec((1, c), lambda k, i, j: (0, 0)),
                pl.BlockSpec((1, c), lambda k, i, j: (0, 0)),
            ],
            out_specs=(
                pl.BlockSpec((t, c), lambda k, i, j: (i, 0)),
                pl.BlockSpec((t, 1), lambda k, i, j: (i, 0)),
            ),
            scratch_shapes=[
                pltpu.VMEM((n_pad, c), jnp.float32),      # h0
                pltpu.VMEM((n_pad, c), compute_dtype),    # h_k (MXU input copy)
                pltpu.VMEM((n_pad, c), jnp.float32),      # h_{k+1} (f32 assembly)
                pltpu.VMEM((t, c), jnp.float32),          # row-tile accumulator
            ],
            # Row axis cannot be core-parallel: hk_cd/hn_f32 carry across i, k.
            compiler_params=pltpu.CompilerParams(
                dimension_semantics=("arbitrary", "arbitrary", "arbitrary"),
                vmem_limit_bytes=vmem_limit),
        )(a_p, x_p, w1f, b1r, w2f, b2r, w_row)

    return gated[:n], score[:n, 0]


# Pure-JAX reference of the fused core (for correctness checks).
def _core_reference(a_hat, x, w1, b1, w2, b2, topk_w, alpha=0.2, K=8):
    hp = jax.lax.Precision.HIGHEST
    h0 = jnp.maximum(jnp.dot(x, w1, precision=hp) + b1, 0.0)
    h0 = jnp.dot(h0, w2, precision=hp) + b2
    h = h0
    for _ in range(K):
        h = (1.0 - alpha) * jnp.dot(a_hat, h, precision=hp) + alpha * h0
    w = topk_w / jnp.linalg.norm(topk_w)
    gate = jnp.tanh(h @ w)
    return h * gate[:, None], gate


# ----------------------------------------------------------------------------
# Device-side segmented TopK (PyG topk semantics: per-graph, score descending,
# concatenated in graph order, k = ceil(ratio * num_nodes_in_graph)).
# ----------------------------------------------------------------------------
def segmented_topk(score, seg_ids, num_segments, ratio):
    npool = score.shape[0]
    order = jnp.lexsort((-score, seg_ids))     # primary: segment asc, then score desc
    sorted_seg = seg_ids[order]
    counts = jnp.bincount(seg_ids, length=num_segments)
    starts = jnp.concatenate(
        [jnp.zeros((1,), counts.dtype), jnp.cumsum(counts)[:-1]])
    rank = jnp.arange(npool, dtype=jnp.int32) - starts[sorted_seg]
    k_per_seg = jnp.ceil(ratio * counts.astype(jnp.float32)).astype(jnp.int32)
    keep = rank < k_per_seg[sorted_seg]
    # Boolean gather is shape-dynamic -> resolved eagerly (single sync).
    return order[keep].astype(jnp.int32)


# ----------------------------------------------------------------------------
# Glue: the data-dependent graph plumbing of Hpool.forward (eager JAX)
# ----------------------------------------------------------------------------
class Args:
    pool_act = 'relu'
    pool_drop = 0.0
    poollist = [8]
    pool_pool_type = 'topk'
    hierarchical_pool_rate = [0.5]


def hpool_forward(params, x, edge_index, edge_attr, batch, args, layer_i=0,
                  compute_dtype=jnp.bfloat16):
    x = jnp.asarray(x, jnp.float32)
    edge_index = jnp.asarray(edge_index, jnp.int32)
    batch = jnp.asarray(batch, jnp.int32)
    n, c = x.shape
    num_graphs = int(batch.max()) + 1

    num_nodes = jnp.bincount(batch, length=num_graphs)             # scatter-sum of ones
    select_sample = num_nodes > args.poollist[layer_i]
    if int(select_sample.sum()) == 0:
        return x, edge_index, edge_attr, batch, 0

    perm = jnp.repeat(select_sample, num_nodes)                    # bool node mask
    node_index = jnp.arange(n, dtype=jnp.int32)
    select_node_index = node_index[perm]
    n_pool = int(select_node_index.shape[0])

    # FilterEdges: keep edges whose endpoints are both selected, relabel.
    src, dst = edge_index[0], edge_index[1]
    emask = perm[src] & perm[dst]
    relabel = jnp.full((n,), -1, jnp.int32).at[select_node_index].set(
        jnp.arange(n_pool, dtype=jnp.int32))
    ei_pool_before = jnp.stack([relabel[src[emask]], relabel[dst[emask]]])
    batch_pool_before = batch[perm]

    x_pool_before = x[perm]
    x_unpool = x[~perm]

    # Dense gcn_norm adjacency with self-loops: A_hat = D^-1/2 (A + I) D^-1/2
    a = jnp.zeros((n_pool, n_pool), jnp.float32).at[
        ei_pool_before[1], ei_pool_before[0]].add(1.0)             # A[target, source]
    a = a + jnp.eye(n_pool, dtype=jnp.float32)
    deg = a.sum(axis=1)
    dinv = jnp.where(deg > 0, 1.0 / jnp.sqrt(deg), 0.0)
    a_hat = dinv[:, None] * a * dinv[None, :]
    # TODO(synk): exploit block-diagonality of the batched adjacency instead of
    # materializing the dense n_pool^2 matrix (scalar-prefetched graph offsets).

    # --- hot path: fused MLP + APPNP + TopK scoring (single Pallas kernel) ---
    # args.pool_drop == 0  -> dropout branch is skipped (matches the module)
    gated, score = hpool_core_pallas(
        a_hat, x_pool_before,
        params['w1'], params['b1'], params['w2'], params['b2'], params['topk_w'],
        compute_dtype=compute_dtype)

    # TopK selection per graph (device-side segmented top-k).
    ratio = args.hierarchical_pool_rate[layer_i]
    perm_pool_after = segmented_topk(score, batch_pool_before, num_graphs, ratio)

    x_pool_after = gated[perm_pool_after]                          # already score-gated
    batch_pool_after = batch_pool_before[perm_pool_after]

    num_nodes_pool_after = jnp.bincount(batch_pool_after, length=num_graphs)
    cat_num_node = jnp.where(num_nodes_pool_after == 0, num_nodes,
                             num_nodes_pool_after)

    perm_cat_pool = jnp.repeat(select_sample, cat_num_node)
    perm_cat_unpool = ~perm_cat_pool
    x_num = int(x_pool_after.shape[0]) + int((~perm).sum())
    x_cat = jnp.zeros((x_num, c), jnp.float32)
    x_cat = x_cat.at[jnp.nonzero(perm_cat_pool)[0]].set(x_pool_after)
    x_cat = x_cat.at[jnp.nonzero(perm_cat_unpool)[0]].set(x_unpool)

    batch_cat_pool = jnp.repeat(jnp.arange(num_graphs, dtype=jnp.int32),
                                cat_num_node)

    node_pool_index = node_index[perm]
    node_unpool_index = node_index[~perm]
    subgraph_index = jnp.sort(jnp.concatenate(
        [node_unpool_index, node_pool_index[perm_pool_after]]))

    # add_self_loops -> subgraph(relabel_nodes=True) -> remove_self_loops
    ei_sl = jnp.concatenate([edge_index, jnp.stack([node_index, node_index])], axis=1)
    in_sub = jnp.zeros((n,), bool).at[subgraph_index].set(True)
    smask = in_sub[ei_sl[0]] & in_sub[ei_sl[1]]
    relabel2 = jnp.full((n,), -1, jnp.int32).at[subgraph_index].set(
        jnp.arange(subgraph_index.shape[0], dtype=jnp.int32))
    cat_edge_index = jnp.stack([relabel2[ei_sl[0][smask]], relabel2[ei_sl[1][smask]]])
    not_self = cat_edge_index[0] != cat_edge_index[1]
    cat_edge_index = cat_edge_index[:, not_self]
    # edge_attr is None here: the reference code adds self-loops to edge_index
    # without extending edge_attr, which only type-checks when edge_attr is None.
    cat_edge_attr = None

    return x_cat, cat_edge_index, cat_edge_attr, batch_cat_pool, select_sample[None, :]


# ----------------------------------------------------------------------------
if __name__ == "__main__":
    C = 32
    args = Args()

    key = jax.random.PRNGKey(0)
    k1, k2, k3, kx, k5, k6, k7 = jax.random.split(key, 7)
    scale = 1.0 / math.sqrt(C)
    params = dict(
        w1=jax.random.normal(k1, (C, C), jnp.float32) * scale,
        b1=jnp.zeros((C,), jnp.float32),
        w2=jax.random.normal(k2, (C, C), jnp.float32) * scale,
        b2=jnp.zeros((C,), jnp.float32),
        topk_w=jax.random.normal(k3, (C,), jnp.float32),
    )

    # Two graphs: 12 nodes (selected for pooling, > poollist=8) + 6 nodes (kept).
    def ring_edges(start, m):
        idx = np.arange(start, start + m)
        nxt = np.roll(idx, -1)
        return np.stack([np.concatenate([idx, nxt]), np.concatenate([nxt, idx])])

    edge_index = np.concatenate([ring_edges(0, 12), ring_edges(12, 6)], axis=1)
    batch = np.concatenate([np.zeros(12, np.int32), np.ones(6, np.int32)])
    x = jax.random.normal(kx, (18, C), jnp.float32)

    out = hpool_forward(params, x, edge_index, None, batch, args, layer_i=0)
    x_cat, cat_edge_index, cat_edge_attr, batch_cat_pool, select_sample = out
    jax.block_until_ready(x_cat)
    jax.block_until_ready(cat_edge_index)
    jax.block_until_ready(batch_cat_pool)
    assert np.all(np.isfinite(np.asarray(x_cat)))

    # --- check 1: standalone MLP kernel vs plain JAX ---
    xa = jax.random.normal(k5, (700, C), jnp.float32)
    y_k = mlp_pallas(xa, params['w1'], params['b1'], params['w2'], params['b2'])
    hi = jnp.maximum(jnp.dot(xa, params['w1'],
                             precision=jax.lax.Precision.HIGHEST) + params['b1'], 0.0)
    y_r = jnp.dot(hi, params['w2'],
                  precision=jax.lax.Precision.HIGHEST) + params['b2']
    assert np.allclose(np.asarray(y_k), np.asarray(y_r), atol=2e-2, rtol=2e-2)

    # --- check 2: fused monolithic kernel (f32 compute) vs pure-JAX reference ---
    nchk = 300
    a_rnd = jax.random.uniform(k6, (nchk, nchk), jnp.float32)
    a_rnd = 0.5 * (a_rnd + a_rnd.T) / nchk
    x_rnd = jax.random.normal(k7, (nchk, C), jnp.float32)
    g_m, s_m = hpool_core_pallas(a_rnd, x_rnd, params['w1'], params['b1'],
                                 params['w2'], params['b2'], params['topk_w'],
                                 compute_dtype=jnp.float32)
    g_ref, s_ref = _core_reference(a_rnd, x_rnd, params['w1'], params['b1'],
                                   params['w2'], params['b2'], params['topk_w'])
    jax.block_until_ready(g_m)
    assert np.allclose(np.asarray(g_m), np.asarray(g_ref), atol=2e-2, rtol=2e-2)
    assert np.allclose(np.asarray(s_m), np.asarray(s_ref), atol=2e-2, rtol=2e-2)

    # --- check 3: tiled path (grid 8x3x3) vs monolithic, f32 compute ---
    g_t, s_t = hpool_core_pallas(a_rnd, x_rnd, params['w1'], params['b1'],
                                 params['w2'], params['b2'], params['topk_w'],
                                 compute_dtype=jnp.float32,
                                 force_tiled=True, tile=128)
    jax.block_until_ready(g_t)
    assert np.allclose(np.asarray(g_m), np.asarray(g_t), atol=2e-3, rtol=2e-3)
    assert np.allclose(np.asarray(s_m), np.asarray(s_t), atol=2e-3, rtol=2e-3)

    # --- check 4: tiled path with the generation-default tile (clamped, nj=1) ---
    g_t2, s_t2 = hpool_core_pallas(a_rnd, x_rnd, params['w1'], params['b1'],
                                   params['w2'], params['b2'], params['topk_w'],
                                   compute_dtype=jnp.float32, force_tiled=True)
    jax.block_until_ready(g_t2)
    assert np.allclose(np.asarray(g_m), np.asarray(g_t2), atol=2e-3, rtol=2e-3)
    assert np.allclose(np.asarray(s_m), np.asarray(s_t2), atol=2e-3, rtol=2e-3)

    print("KERNEL_OK")
</pallas_src>

<mosaic_0001>
module attributes {stable_mosaic.version = 11 : i64} {
  func.func @_hpool_core_kernel(%arg0: memref<128x128xbf16, #tpu.memory_space<vmem>>, %arg1: memref<128x32xf32, #tpu.memory_space<vmem>>, %arg2: memref<32x32xf32, #tpu.memory_space<vmem>>, %arg3: memref<1x32xf32, #tpu.memory_space<vmem>>, %arg4: memref<32x32xf32, #tpu.memory_space<vmem>>, %arg5: memref<1x32xf32, #tpu.memory_space<vmem>>, %arg6: memref<1x32xf32, #tpu.memory_space<vmem>>, %arg7: memref<128x32xf32, #tpu.memory_space<vmem>>, %arg8: memref<128x1xf32, #tpu.memory_space<vmem>>) attributes {dimension_semantics = [], scalar_prefetch = 0 : i64, scratch_operands = 0 : i64, tpu.core_type = #tpu.core_type<tc>} {
    %c0 = arith.constant 0 : index
    %c0_0 = arith.constant 0 : index
    %0 = vector.load %arg1[%c0, %c0_0] : memref<128x32xf32, #tpu.memory_space<vmem>>, vector<128x32xf32>
    %c0_1 = arith.constant 0 : index
    %c0_2 = arith.constant 0 : index
    %1 = vector.load %arg2[%c0_1, %c0_2] : memref<32x32xf32, #tpu.memory_space<vmem>>, vector<32x32xf32>
    %cst = arith.constant dense<0.000000e+00> : vector<128x32xf32>
    %2 = tpu.matmul %0, %1, %cst {dimension_numbers = #tpu.dot_dimension_numbers<[1], [0], [0], [1], [0, 0, 1, 1], [], []>} : vector<128x32xf32>, vector<32x32xf32>, vector<128x32xf32> -> vector<128x32xf32>
    %c0_3 = arith.constant 0 : index
    %c0_4 = arith.constant 0 : index
    %3 = vector.load %arg3[%c0_3, %c0_4] : memref<1x32xf32, #tpu.memory_space<vmem>>, vector<1x32xf32>
    %4 = vector.broadcast %3 : vector<1x32xf32> to vector<128x32xf32>
    %5 = arith.addf %2, %4 : vector<128x32xf32>
    %cst_5 = arith.constant 0.000000e+00 : f32
    %6 = vector.broadcast %cst_5 : f32 to vector<128x32xf32>
    %7 = arith.maximumf %5, %6 : vector<128x32xf32>
    %c0_6 = arith.constant 0 : index
    %c0_7 = arith.constant 0 : index
    %8 = vector.load %arg4[%c0_6, %c0_7] : memref<32x32xf32, #tpu.memory_space<vmem>>, vector<32x32xf32>
    %cst_8 = arith.constant dense<0.000000e+00> : vector<128x32xf32>
    %9 = tpu.matmul %7, %8, %cst_8 {dimension_numbers = #tpu.dot_dimension_numbers<[1], [0], [0], [1], [0, 0, 1, 1], [], []>} : vector<128x32xf32>, vector<32x32xf32>, vector<128x32xf32> -> vector<128x32xf32>
    %c0_9 = arith.constant 0 : index
    %c0_10 = arith.constant 0 : index
    %10 = vector.load %arg5[%c0_9, %c0_10] : memref<1x32xf32, #tpu.memory_space<vmem>>, vector<1x32xf32>
    %11 = vector.broadcast %10 : vector<1x32xf32> to vector<128x32xf32>
    %12 = arith.addf %9, %11 : vector<128x32xf32>
    %c0_11 = arith.constant 0 : index
    %c0_12 = arith.constant 0 : index
    %13 = vector.load %arg0[%c0_11, %c0_12] : memref<128x128xbf16, #tpu.memory_space<vmem>>, vector<128x128xbf16>
    %cst_13 = arith.constant 2.000000e-01 : f32
    %14 = vector.broadcast %cst_13 : f32 to vector<128x32xf32>
    %15 = arith.mulf %14, %12 : vector<128x32xf32>
    %16 = arith.truncf %12 : vector<128x32xf32> to vector<128x32xbf16>
    %cst_14 = arith.constant dense<0.000000e+00> : vector<128x32xf32>
    %17 = tpu.matmul %13, %16, %cst_14 {dimension_numbers = #tpu.dot_dimension_numbers<[1], [0], [0], [1], [0, 0, 1, 1], [], []>} : vector<128x128xbf16>, vector<128x32xbf16>, vector<128x32xf32> -> vector<128x32xf32>
    %cst_15 = arith.constant 8.000000e-01 : f32
    %18 = vector.broadcast %cst_15 : f32 to vector<128x32xf32>
    %19 = arith.mulf %18, %17 : vector<128x32xf32>
    %20 = arith.addf %19, %15 : vector<128x32xf32>
    %21 = arith.truncf %20 : vector<128x32xf32> to vector<128x32xbf16>
    %cst_16 = arith.constant dense<0.000000e+00> : vector<128x32xf32>
    %22 = tpu.matmul %13, %21, %cst_16 {dimension_numbers = #tpu.dot_dimension_numbers<[1], [0], [0], [1], [0, 0, 1, 1], [], []>} : vector<128x128xbf16>, vector<128x32xbf16>, vector<128x32xf32> -> vector<128x32xf32>
    %cst_17 = arith.constant 8.000000e-01 : f32
    %23 = vector.broadcast %cst_17 : f32 to vector<128x32xf32>
    %24 = arith.mulf %23, %22 : vector<128x32xf32>
    %25 = arith.addf %24, %15 : vector<128x32xf32>
    %26 = arith.truncf %25 : vector<128x32xf32> to vector<128x32xbf16>
    %cst_18 = arith.constant dense<0.000000e+00> : vector<128x32xf32>
    %27 = tpu.matmul %13, %26, %cst_18 {dimension_numbers = #tpu.dot_dimension_numbers<[1], [0], [0], [1], [0, 0, 1, 1], [], []>} : vector<128x128xbf16>, vector<128x32xbf16>, vector<128x32xf32> -> vector<128x32xf32>
    %cst_19 = arith.constant 8.000000e-01 : f32
    %28 = vector.broadcast %cst_19 : f32 to vector<128x32xf32>
    %29 = arith.mulf %28, %27 : vector<128x32xf32>
    %30 = arith.addf %29, %15 : vector<128x32xf32>
    %31 = arith.truncf %30 : vector<128x32xf32> to vector<128x32xbf16>
    %cst_20 = arith.constant dense<0.000000e+00> : vector<128x32xf32>
    %32 = tpu.matmul %13, %31, %cst_20 {dimension_numbers = #tpu.dot_dimension_numbers<[1], [0], [0], [1], [0, 0, 1, 1], [], []>} : vector<128x128xbf16>, vector<128x32xbf16>, vector<128x32xf32> -> vector<128x32xf32>
    %cst_21 = arith.constant 8.000000e-01 : f32
    %33 = vector.broadcast %cst_21 : f32 to vector<128x32xf32>
    %34 = arith.mulf %33, %32 : vector<128x32xf32>
    %35 = arith.addf %34, %15 : vector<128x32xf32>
    %36 = arith.truncf %35 : vector<128x32xf32> to vector<128x32xbf16>
    %cst_22 = arith.constant dense<0.000000e+00> : vector<128x32xf32>
    %37 = tpu.matmul %13, %36, %cst_22 {dimension_numbers = #tpu.dot_dimension_numbers<[1], [0], [0], [1], [0, 0, 1, 1], [], []>} : vector<128x128xbf16>, vector<128x32xbf16>, vector<128x32xf32> -> vector<128x32xf32>
    %cst_23 = arith.constant 8.000000e-01 : f32
    %38 = vector.broadcast %cst_23 : f32 to vector<128x32xf32>
    %39 = arith.mulf %38, %37 : vector<128x32xf32>
    %40 = arith.addf %39, %15 : vector<128x32xf32>
    %41 = arith.truncf %40 : vector<128x32xf32> to vector<128x32xbf16>
    %cst_24 = arith.constant dense<0.000000e+00> : vector<128x32xf32>
    %42 = tpu.matmul %13, %41, %cst_24 {dimension_numbers = #tpu.dot_dimension_numbers<[1], [0], [0], [1], [0, 0, 1, 1], [], []>} : vector<128x128xbf16>, vector<128x32xbf16>, vector<128x32xf32> -> vector<128x32xf32>
    %cst_25 = arith.constant 8.000000e-01 : f32
    %43 = vector.broadcast %cst_25 : f32 to vector<128x32xf32>
    %44 = arith.mulf %43, %42 : vector<128x32xf32>
    %45 = arith.addf %44, %15 : vector<128x32xf32>
    %46 = arith.truncf %45 : vector<128x32xf32> to vector<128x32xbf16>
    %cst_26 = arith.constant dense<0.000000e+00> : vector<128x32xf32>
    %47 = tpu.matmul %13, %46, %cst_26 {dimension_numbers = #tpu.dot_dimension_numbers<[1], [0], [0], [1], [0, 0, 1, 1], [], []>} : vector<128x128xbf16>, vector<128x32xbf16>, vector<128x32xf32> -> vector<128x32xf32>
    %cst_27 = arith.constant 8.000000e-01 : f32
    %48 = vector.broadcast %cst_27 : f32 to vector<128x32xf32>
    %49 = arith.mulf %48, %47 : vector<128x32xf32>
    %50 = arith.addf %49, %15 : vector<128x32xf32>
    %51 = arith.truncf %50 : vector<128x32xf32> to vector<128x32xbf16>
    %cst_28 = arith.constant dense<0.000000e+00> : vector<128x32xf32>
    %52 = tpu.matmul %13, %51, %cst_28 {dimension_numbers = #tpu.dot_dimension_numbers<[1], [0], [0], [1], [0, 0, 1, 1], [], []>} : vector<128x128xbf16>, vector<128x32xbf16>, vector<128x32xf32> -> vector<128x32xf32>
    %cst_29 = arith.constant 8.000000e-01 : f32
    %53 = vector.broadcast %cst_29 : f32 to vector<128x32xf32>
    %54 = arith.mulf %53, %52 : vector<128x32xf32>
    %55 = arith.addf %54, %15 : vector<128x32xf32>
    %c0_30 = arith.constant 0 : index
    %c0_31 = arith.constant 0 : index
    %56 = vector.load %arg6[%c0_30, %c0_31] : memref<1x32xf32, #tpu.memory_space<vmem>>, vector<1x32xf32>
    %57 = vector.broadcast %56 : vector<1x32xf32> to vector<128x32xf32>
    %58 = arith.mulf %55, %57 : vector<128x32xf32>
    %cst_32 = arith.constant dense<0.000000e+00> : vector<128xf32>
    %59 = vector.multi_reduction <add>, %58, %cst_32 [1] : vector<128x32xf32> to vector<128xf32>
    %60 = vector.shape_cast %59 : vector<128xf32> to vector<128x1xf32>
    %61 = math.tanh %60 : vector<128x1xf32>
    %62 = vector.broadcast %61 : vector<128x1xf32> to vector<128x32xf32>
    %63 = arith.mulf %55, %62 : vector<128x32xf32>
    %c0_33 = arith.constant 0 : index
    %c0_34 = arith.constant 0 : index
    %64 = vector.load %arg7[%c0_33, %c0_34] : memref<128x32xf32, #tpu.memory_space<vmem>>, vector<128x32xf32>
    tpu.vector_store %arg7[%c0_33, %c0_34], %63 {strides = array<i32>} : memref<128x32xf32, #tpu.memory_space<vmem>>, vector<128x32xf32>,
    %c0_35 = arith.constant 0 : index
    %c0_36 = arith.constant 0 : index
    %65 = vector.load %arg8[%c0_35, %c0_36] : memref<128x1xf32, #tpu.memory_space<vmem>>, vector<128x1xf32>
    tpu.vector_store %arg8[%c0_35, %c0_36], %61 {strides = array<i32>} : memref<128x1xf32, #tpu.memory_space<vmem>>, vector<128x1xf32>,
    return
  }
}

</mosaic_0001>

<bundles_post_ra>
// kernel: tpu_custom_call.1
= control target key start
LH: loop header
LB: loop body
LE: loop exit
PB: predicated region body
PF: predicated region fallthrough
CT: control target
= control target key end

     0   :  { %vm56_vm0 = vcmask 261120   ;;  %vm1765_vm1 = vcmask 7168   ;;  %s3110_s2 = inlined_call_operand.vmem [shape: f32[32,32], index: 2, kind: input, shape index: {}]   ;;  %s3111_s1 = inlined_call_operand.vmem [shape: f32[128,32], index: 1, kind: input, shape index: {}]   ;;  %s3112_s4 = inlined_call_operand.vmem [shape: f32[32,32], index: 4, kind: input, shape index: {}]   ;;  %s3113_s3 = inlined_call_operand.vmem [shape: f32[1,32], index: 3, kind: input, shape index: {}]   ;;  %s3114_s0 = inlined_call_operand.vmem [shape: bf16[128,128], index: 0, kind: input, shape index: {}]   ;;  %s3115_s5 = inlined_call_operand.vmem [shape: f32[1,32], index: 5, kind: input, shape index: {}]   ;;  %s3116_s6 = inlined_call_operand.vmem [shape: f32[1,32], index: 6, kind: input, shape index: {}]   ;;  %s3117_s8 = inlined_call_operand.vmem [shape: f32[128,1], index: 8, kind: output, shape index: {1}]   ;;  %s3118_s7 = inlined_call_operand.vmem [shape: f32[128,32], index: 7, kind: output, shape index: {0}]  }
   0x1   :  { %v45_v0 = vld [vmem:[%s3110_s2] sm:$0xff]  ;;  %v46_v1 = vld [vmem:[%s3110_s2 + $0x8] sm:$0xff]  ;;  %v47_v2 = vld [vmem:[%s3110_s2 + $0x10] sm:$0xff] }
   0x2   :  { %v2321_v3 = vpack.c.bf16 %v46_v1, %v45_v0  ;;  %v48_v4 = vld [vmem:[%s3110_s2 + $0x18] sm:$0xff]  ;;  %v29_v5 = vld [vmem:[%s3111_s1] sm:$0xff]  ;;  %v267_v8 = vld [vmem:[%s3112_s4 + $0x8] sm:$0xff] }
   0x3   :  { %v2325_v6 = vpack.c.bf16 %v48_v4, %v47_v2  ;;  %2009 = vmatprep.mubr.msk.f32.mxu0 %vm56_vm0, %v29_v5  ;;  %v266_v7 = vld [vmem:[%s3112_s4] sm:$0xff]  ;;  %v30_v9 = vld [vmem:[%s3111_s1 + $0x8] sm:$0xff]  ;;  %v31_v11 = vld [vmem:[%s3111_s1 + $0x10] sm:$0xff] }
   0x4   :  { %2322 = vmatprep.subr.bf16.mxu0 %v2321_v3  ;;  %v2329_v10 = vpack.c.bf16 %v267_v8, %v266_v7  ;;  %v32_v12 = vld [vmem:[%s3111_s1 + $0x18] sm:$0xff]  ;;  %v33_v13 = vld [vmem:[%s3111_s1 + $0x20] sm:$0xff]  ;;  %v34_v14 = vld [vmem:[%s3111_s1 + $0x28] sm:$0xff] }
   0x5   :  { %2324 = vmatpush3.bf16.msra.mxu0 %v2321_v3  ;;  %v35_v15 = vld [vmem:[%s3111_s1 + $0x30] sm:$0xff]  ;;  %v36_v16 = vld [vmem:[%s3111_s1 + $0x38] sm:$0xff]  ;;  %v37_v17 = vld [vmem:[%s3111_s1 + $0x40] sm:$0xff] }
   0x6   :  { %2326 = vmatprep.subr.bf16.mxu0 %v2325_v6  ;;  %2330 = vmatprep.subr.bf16.mxu1 %v2329_v10  ;;  %v38_v18 = vld [vmem:[%s3111_s1 + $0x48] sm:$0xff]  ;;  %v39_v19 = vld [vmem:[%s3111_s1 + $0x50] sm:$0xff]  ;;  %v40_v20 = vld [vmem:[%s3111_s1 + $0x58] sm:$0xff] }
   0x7   :  { %2332 = vmatpush3.bf16.msra.mxu1 %v2329_v10  ;;  %v41_v21 = vld [vmem:[%s3111_s1 + $0x60] sm:$0xff]  ;;  %v42_v22 = vld [vmem:[%s3111_s1 + $0x68] sm:$0xff]  ;;  %v43_v23 = vld [vmem:[%s3111_s1 + $0x70] sm:$0xff] }
   0x8   :  { %v44_v24 = vld [vmem:[%s3111_s1 + $0x78] sm:$0xff]  ;;  %v268_v25 = vld [vmem:[%s3112_s4 + $0x10] sm:$0xff]  ;;  %v1790_v28 = vld [vmem:[%s3113_s3] ss:$0 sm:$0xff] }
   0x9   :  { %2328 = vmatpush3.bf16.msra.mxu0 %v2325_v6  ;;  %v269_v26 = vld [vmem:[%s3112_s4 + $0x18] sm:$0xff] }
   0xa   :  { %v2333_v27 = vpack.c.bf16 %v269_v26, %v268_v25 }
   0xc   :  { %2010 = vmatmul.mubr.msk.f32.vlgmr.msra.gmra.mrb[0].mxu0 %vm56_vm0, %v30_v9  ;;  %2334 = vmatprep.subr.bf16.mxu1 %v2333_v27 }
   0xd   :  { %2012 = vmatprep.mubr.msk.f32.mxu0 %vm56_vm0, %v31_v11  ;;  %2336 = vmatpush3.bf16.msra.mxu1 %v2333_v27 }
  0x10   :  { %2013 = vmatmul.mubr.msk.f32.gmra.mrb[2].mxu0 %vm56_vm0, %v32_v12 }
  0x11   :  { %2015 = vmatprep.mubr.msk.f32.mxu0 %vm56_vm0, %v33_v13  ;;  %v2539_v13 = vld [vmem:[%s3114_s0] sm:$0xff]  }
  0x14   :  { %2016 = vmatmul.mubr.msk.f32.gmra.mrb[4].mxu0 %vm56_vm0, %v34_v14  ;;  %v1807_v14 = vld [vmem:[%s3115_s5] ss:$0 sm:$0xff] }
  0x15   :  { %2018 = vmatprep.mubr.msk.f32.mxu0 %vm56_vm0, %v35_v15 }
  0x18   :  { %2019 = vmatmul.mubr.msk.f32.gmra.mrb[6].mxu0 %vm56_vm0, %v36_v16 }
  0x19   :  { %2021 = vmatprep.mubr.msk.f32.mxu0 %vm56_vm0, %v37_v17 }
  0x1c   :  { %2022 = vmatmul.mubr.msk.f32.gmra.mrb[8].mxu0 %vm56_vm0, %v38_v18 }
  0x1d   :  { %2024 = vmatprep.mubr.msk.f32.mxu0 %vm56_vm0, %v39_v19 }
  0x20   :  { %2025 = vmatmul.mubr.msk.f32.gmra.mrb[10].mxu0 %vm56_vm0, %v40_v20 }
  0x21   :  { %2027 = vmatprep.mubr.msk.f32.mxu0 %vm56_vm0, %v41_v21 }
  0x24   :  { %2028 = vmatmul.mubr.msk.f32.gmra.mrb[12].mxu0 %vm56_vm0, %v42_v22 }
  0x25   :  { %2030 = vmatprep.mubr.msk.f32.mxu0 %vm56_vm0, %v43_v23 }
  0x28   :  { %2031 = vmatmul.mubr.msk.f32.gmra.mrb[14].mxu0 %vm56_vm0, %v44_v24 }
  0x29   :  { %2081 = vmatprep.mubr.bf16.mxu0 %v2539_v13 }
  0xdf   :  { %v2011_v29 = vpop.f32.mrb[0].mxu0 }
  0xe0   :  { %v177_v30 = vadd.f32 %v2011_v29, %v1790_v28  ;;  %v171_v31 = vpop.f32.mrb[1].mxu0 }
  0xe1   :  { %v172_v32 = vadd.f32 %v1790_v28, %v171_v31 }
  0xe2   :  { %v251_v35 = vmax.f32 %v177_v30, 0.0 }
  0xe3   :  { %v250_v33 = vmax.f32 %v172_v32, 0.0  ;;  %v2014_v34 = vpop.f32.mrb[2].mxu0 }
  0xe4   :  { %v187_v36 = vadd.f32 %v2014_v34, %v1790_v28  ;;  %v181_v37 = vpop.f32.mrb[3].mxu0 }
  0xe5   :  { %v182_v38 = vadd.f32 %v1790_v28, %v181_v37  ;;  %2041 = vmatprep.mubr.msk.f32.mxu1 %vm56_vm0, %v250_v33 }
  0xe6   :  { %2042 = vmatmul.mubr.msk.f32.vlgmr.msra.gmra.mrb[0].mxu1 %vm56_vm0, %v251_v35  ;;  %v253_v41 = vmax.f32 %v187_v36, 0.0 }
  0xe7   :  { %v252_v39 = vmax.f32 %v182_v38, 0.0  ;;  %v2017_v40 = vpop.f32.mrb[4].mxu0 }
  0xe8   :  { %v197_v42 = vadd.f32 %v2017_v40, %v1790_v28  ;;  %v191_v43 = vpop.f32.mrb[5].mxu0 }
  0xe9   :  { %v192_v44 = vadd.f32 %v1790_v28, %v191_v43  ;;  %2044 = vmatprep.mubr.msk.f32.mxu1 %vm56_vm0, %v252_v39 }
  0xea   :  { %2045 = vmatmul.mubr.msk.f32.gmra.mrb[2].mxu1 %vm56_vm0, %v253_v41  ;;  %v255_v47 = vmax.f32 %v197_v42, 0.0 }
  0xeb   :  { %v254_v45 = vmax.f32 %v192_v44, 0.0  ;;  %v2020_v46 = vpop.f32.mrb[6].mxu0 }
  0xec   :  { %v207_v48 = vadd.f32 %v2020_v46, %v1790_v28  ;;  %v201_v49 = vpop.f32.mrb[7].mxu0 }
  0xed   :  { %v202_v50 = vadd.f32 %v1790_v28, %v201_v49  ;;  %2047 = vmatprep.mubr.msk.f32.mxu1 %vm56_vm0, %v254_v45 }
  0xee   :  { %2048 = vmatmul.mubr.msk.f32.gmra.mrb[4].mxu1 %vm56_vm0, %v255_v47  ;;  %v257_v53 = vmax.f32 %v207_v48, 0.0 }
  0xef   :  { %v256_v51 = vmax.f32 %v202_v50, 0.0  ;;  %v2023_v52 = vpop.f32.mrb[8].mxu0 }
  0xf0   :  { %v217_v54 = vadd.f32 %v2023_v52, %v1790_v28  ;;  %v211_v55 = vpop.f32.mrb[9].mxu0 }
  0xf1   :  { %v212_v56 = vadd.f32 %v1790_v28, %v211_v55  ;;  %2050 = vmatprep.mubr.msk.f32.mxu1 %vm56_vm0, %v256_v51  ;;  %v2597_v55 = vld [vmem:[%s3114_s0 + $0x8] sm:$0xff]  }
  0xf2   :  { %2051 = vmatmul.mubr.msk.f32.gmra.mrb[6].mxu1 %vm56_vm0, %v257_v53  ;;  %v259_v59 = vmax.f32 %v217_v54, 0.0 }
  0xf3   :  { %v258_v57 = vmax.f32 %v212_v56, 0.0  ;;  %v2026_v58 = vpop.f32.mrb[10].mxu0  ;;  %v2602_v56 = vld [vmem:[%s3114_s0 + $0x10] sm:$0xff]  }
  0xf4   :  { %v227_v60 = vadd.f32 %v2026_v58, %v1790_v28  ;;  %v221_v61 = vpop.f32.mrb[11].mxu0  ;;  %v2614_v58 = vld [vmem:[%s3114_s0 + $0x20] sm:$0xff]  }
  0xf5   :  { %v222_v62 = vadd.f32 %v1790_v28, %v221_v61  ;;  %2053 = vmatprep.mubr.msk.f32.mxu1 %vm56_vm0, %v258_v57  ;;  %v2609_v57 = vld [vmem:[%s3114_s0 + $0x18] sm:$0xff]  }
  0xf6   :  { %2054 = vmatmul.mubr.msk.f32.gmra.mrb[8].mxu1 %vm56_vm0, %v259_v59  ;;  %v261_v1 = vmax.f32 %v227_v60, 0.0  ;;  %v2621_v59 = vld [vmem:[%s3114_s0 + $0x28] sm:$0xff]   ;;  %v2626_v60 = vld [vmem:[%s3114_s0 + $0x30] sm:$0xff]   ;;  %v2633_v61 = vld [vmem:[%s3114_s0 + $0x38] sm:$0xff]  }
  0xf7   :  { %v260_v63 = vmax.f32 %v222_v62, 0.0  ;;  %v2029_v0 = vpop.f32.mrb[12].mxu0 }
  0xf8   :  { %v237_v2 = vadd.f32 %v2029_v0, %v1790_v28  ;;  %v231_v3 = vpop.f32.mrb[13].mxu0 }
  0xf9   :  { %v232_v4 = vadd.f32 %v1790_v28, %v231_v3  ;;  %2056 = vmatprep.mubr.msk.f32.mxu1 %vm56_vm0, %v260_v63 }
  0xfa   :  { %2057 = vmatmul.mubr.msk.f32.gmra.mrb[10].mxu1 %vm56_vm0, %v261_v1  ;;  %v263_v7 = vmax.f32 %v237_v2, 0.0 }
  0xfb   :  { %v262_v5 = vmax.f32 %v232_v4, 0.0  ;;  %v2032_v6 = vpop.f32.mrb[14].mxu0 }
  0xfc   :  { %v247_v8 = vadd.f32 %v2032_v6, %v1790_v28  ;;  %v241_v9 = vpop.f32.mrb[15].mxu0 }
  0xfd   :  { %v242_v10 = vadd.f32 %v1790_v28, %v241_v9  ;;  %2059 = vmatprep.mubr.msk.f32.mxu1 %vm56_vm0, %v262_v5 }
  0xfe   :  { %2060 = vmatmul.mubr.msk.f32.gmra.mrb[12].mxu1 %vm56_vm0, %v263_v7  ;;  %v265_v12 = vmax.f32 %v247_v8, 0.0 }
  0xff   :  { %v264_v11 = vmax.f32 %v242_v10, 0.0 }
 0x101   :  { %2062 = vmatprep.mubr.msk.f32.mxu1 %vm56_vm0, %v264_v11 }
 0x102   :  { %2063 = vmatmul.mubr.msk.f32.gmra.mrb[14].mxu1 %vm56_vm0, %v265_v12 }
 0x103   :  { %2113 = vmatprep.mubr.bf16.mxu1 %v2539_v13 }
 0x1b9   :  { %v2043_v15 = vpop.f32.mrb[0].mxu1 }
 0x1ba   :  { %v2546_v16 = vadd.f32 %v2043_v15, %v1807_v14  ;;  %v391_v17 = vpop.f32.mrb[1].mxu1 }
 0x1bb   :  { %v2548_v18 = vadd.f32 %v1807_v14, %v391_v17 }
 0x1bc   :  { %v2644_v7 = vmul.f32 0.2, %v2546_v16 }
 0x1bd   :  { %v502_v19 = vpack.c.bf16 %v2546_v16, %v2548_v18  ;;  %v2046_v20 = vpop.f32.mrb[2].mxu1  ;;  %v2647_v8 = vmul.f32 0.2, %v2548_v18 }
 0x1be   :  { %v2552_v21 = vadd.f32 %v2046_v20, %v1807_v14  ;;  %v401_v22 = vpop.f32.mrb[3].mxu1 }
 0x1bf   :  { %v2554_v23 = vadd.f32 %v1807_v14, %v401_v22  ;;  %2065 = vmatprep.subr.bf16.mxu0 %v502_v19 }
 0x1c0   :  { %2066 = vmatpush3.bf16.msra.mxu0 %v502_v19  ;;  %v2638_v1 = vmul.f32 0.2, %v2552_v21 }
 0x1c1   :  { %v503_v24 = vpack.c.bf16 %v2552_v21, %v2554_v23  ;;  %v2049_v25 = vpop.f32.mrb[4].mxu1  ;;  %v2641_v4 = vmul.f32 0.2, %v2554_v23 }
 0x1c2   :  { %v2558_v26 = vadd.f32 %v2049_v25, %v1807_v14  ;;  %v411_v27 = vpop.f32.mrb[5].mxu1 }
 0x1c3   :  { %v2560_v28 = vadd.f32 %v1807_v14, %v411_v27  ;;  %2067 = vmatprep.subr.bf16.mxu0 %v503_v24 }
 0x1c4   :  { %2068 = vmatpush3.bf16.msra.mxu0 %v503_v24  ;;  %v2660_v27 = vmul.f32 0.2, %v2558_v26 }
 0x1c5   :  { %v504_v29 = vpack.c.bf16 %v2558_v26, %v2560_v28  ;;  %v2052_v30 = vpop.f32.mrb[6].mxu1 }
 0x1c6   :  { %v2564_v31 = vadd.f32 %v2052_v30, %v1807_v14  ;;  %v421_v32 = vpop.f32.mrb[7].mxu1 }
 0x1c7   :  { %v2566_v33 = vadd.f32 %v1807_v14, %v421_v32  ;;  %2069 = vmatprep.subr.bf16.mxu0 %v504_v29 }
 0x1c8   :  { %2070 = vmatpush3.bf16.msra.mxu0 %v504_v29  ;;  %v2654_v16 = vmul.f32 0.2, %v2564_v31  ;;  %v2663_v29 = vmul.f32 0.2, %v2560_v28 }
 0x1c9   :  { %v505_v34 = vpack.c.bf16 %v2564_v31, %v2566_v33  ;;  %v2055_v35 = vpop.f32.mrb[8].mxu1  ;;  %v2657_v23 = vmul.f32 0.2, %v2566_v33 }
 0x1ca   :  { %v2570_v36 = vadd.f32 %v2055_v35, %v1807_v14  ;;  %v431_v37 = vpop.f32.mrb[9].mxu1 }
 0x1cb   :  { %v2572_v38 = vadd.f32 %v1807_v14, %v431_v37  ;;  %2071 = vmatprep.subr.bf16.mxu0 %v505_v34 }
 0x1cc   :  { %2072 = vmatpush3.bf16.msra.mxu0 %v505_v34 }
 0x1cd   :  { %v506_v39 = vpack.c.bf16 %v2570_v36, %v2572_v38  ;;  %v2058_v40 = vpop.f32.mrb[10].mxu1 }
 0x1ce   :  { %v2576_v41 = vadd.f32 %v2058_v40, %v1807_v14  ;;  %v441_v42 = vpop.f32.mrb[11].mxu1 }
 0x1cf   :  { %v2578_v43 = vadd.f32 %v1807_v14, %v441_v42  ;;  %2073 = vmatprep.subr.bf16.mxu0 %v506_v39 }
 0x1d0   :  { %2074 = vmatpush3.bf16.msra.mxu0 %v506_v39  ;;  %v2670_v42 = vmul.f32 0.2, %v2576_v41 }
 0x1d1   :  { %v507_v44 = vpack.c.bf16 %v2576_v41, %v2578_v43  ;;  %v2061_v45 = vpop.f32.mrb[12].mxu1 }
 0x1d2   :  { %v2582_v46 = vadd.f32 %v2061_v45, %v1807_v14  ;;  %v451_v47 = vpop.f32.mrb[13].mxu1  ;;  %v2673_v45 = vmul.f32 0.2, %v2578_v43 }
 0x1d3   :  { %v2584_v48 = vadd.f32 %v1807_v14, %v451_v47  ;;  %2075 = vmatprep.subr.bf16.mxu0 %v507_v44 }
 0x1d4   :  { %2076 = vmatpush3.bf16.msra.mxu0 %v507_v44 }
 0x1d5   :  { %v508_v49 = vpack.c.bf16 %v2582_v46, %v2584_v48  ;;  %v2064_v50 = vpop.f32.mrb[14].mxu1 }
 0x1d6   :  { %v2588_v51 = vadd.f32 %v2064_v50, %v1807_v14  ;;  %v461_v52 = vpop.f32.mrb[15].mxu1  ;;  %v2676_v50 = vmul.f32 0.2, %v2570_v36 }
 0x1d7   :  { %v2590_v53 = vadd.f32 %v1807_v14, %v461_v52  ;;  %2077 = vmatprep.subr.bf16.mxu0 %v508_v49  ;;  %v2679_v52 = vmul.f32 0.2, %v2572_v38 }
 0x1d8   :  { %2078 = vmatpush3.bf16.msra.mxu0 %v508_v49 }
 0x1d9   :  { %v509_v54 = vpack.c.bf16 %v2588_v51, %v2590_v53 }
 0x1db   :  { %2079 = vmatprep.subr.bf16.mxu0 %v509_v54 }
 0x1dc   :  { %2080 = vmatpush3.bf16.msra.mxu0 %v509_v54 }
 0x1df   :  { %2082 = vmatmul.mubr.bf16.vlgmr.msra.gmra.mrb[16].mxu0 %v2597_v55 }
 0x1e0   :  { %2085 = vmatprep.mubr.bf16.mxu0 %v2602_v56 }
 0x1e7   :  { %2086 = vmatmul.mubr.bf16.gmra.mrb[20].mxu0 %v2609_v57 }
 0x1e8   :  { %2089 = vmatprep.mubr.bf16.mxu0 %v2614_v58 }
 0x1ef   :  { %2090 = vmatmul.mubr.bf16.gmra.mrb[24].mxu0 %v2621_v59 }
 0x1f0   :  { %2093 = vmatprep.mubr.bf16.mxu0 %v2626_v60 }
 0x1f7   :  { %2094 = vmatmul.mubr.bf16.gmra.mrb[28].mxu0 %v2633_v61 }
 0x1f8   :  { %2145 = vmatprep.mubr.bf16.mxu0 %v2539_v13 }
 0x2b2   :  { %v2083_v62 = vpop.f32.mrb[16].mxu0 }
 0x2b3   :  { %v657_v63 = vmul.f32 0.8, %v2083_v62  ;;  %v592_v0 = vpop.f32.mrb[17].mxu0 }
 0x2b4   :  { %v655_v2 = vmul.f32 0.8, %v592_v0  ;;  %v2084_v3 = vpop.f32.mrb[18].mxu0 }
 0x2b5   :  { %v658_v5 = vmul.f32 0.8, %v2084_v3  ;;  %v595_v6 = vpop.f32.mrb[19].mxu0  ;;  %v673_v10 = vadd.f32 %v657_v63, %v2641_v4 }
 0x2b6   :  { %v656_v9 = vmul.f32 0.8, %v595_v6  ;;  %v671_v12 = vadd.f32 %v655_v2, %v2647_v8  ;;  %v2686_v6 = vmul.f32 0.2, %v2588_v51 }
 0x2b7   :  { %v674_v11 = vadd.f32 %v658_v5, %v2638_v1 }
 0x2b8   :  { %v672_v14 = vadd.f32 %v656_v9, %v2644_v7 }
 0x2b9   :  { %v688_v15 = vpack.c.bf16 %v674_v11, %v673_v10  ;;  %v2689_v10 = vmul.f32 0.2, %v2590_v53 }
 0x2ba   :  { %v2087_v17 = vpop.f32.mrb[20].mxu0  ;;  %v687_v19 = vpack.c.bf16 %v672_v14, %v671_v12  ;;  %v2692_v14 = vmul.f32 0.2, %v2582_v46 }
 0x2bb   :  { %v661_v20 = vmul.f32 0.8, %v2087_v17  ;;  %v608_v21 = vpop.f32.mrb[21].mxu0 }
 0x2bc   :  { %v659_v22 = vmul.f32 0.8, %v608_v21  ;;  %v2088_v18 = vpop.f32.mrb[22].mxu0  ;;  %2097 = vmatprep.subr.bf16.mxu1 %v687_v19 }
 0x2bd   :  { %v662_v24 = vmul.f32 0.8, %v2088_v18  ;;  %v611_v25 = vpop.f32.mrb[23].mxu0  ;;  %2098 = vmatpush3.bf16.msra.mxu1 %v687_v19  ;;  %v677_v31 = vadd.f32 %v661_v20, %v2657_v23 }
 0x2be   :  { %v660_v30 = vmul.f32 0.8, %v611_v25  ;;  %2099 = vmatprep.subr.bf16.mxu1 %v688_v15  ;;  %v675_v34 = vadd.f32 %v659_v22, %v2663_v29 }
 0x2bf   :  { %v678_v32 = vadd.f32 %v662_v24, %v2654_v16 }
 0x2c0   :  { %v676_v33 = vadd.f32 %v660_v30, %v2660_v27 }
 0x2c1   :  { %2100 = vmatpush3.bf16.msra.mxu1 %v688_v15  ;;  %v690_v35 = vpack.c.bf16 %v678_v32, %v677_v31  ;;  %v2695_v15 = vmul.f32 0.2, %v2584_v48 }
 0x2c2   :  { %v2091_v37 = vpop.f32.mrb[24].mxu0  ;;  %v689_v39 = vpack.c.bf16 %v676_v33, %v675_v34 }
 0x2c3   :  { %v665_v40 = vmul.f32 0.8, %v2091_v37  ;;  %v624_v26 = vpop.f32.mrb[25].mxu0 }
 0x2c4   :  { %v663_v28 = vmul.f32 0.8, %v624_v26  ;;  %v2092_v44 = vpop.f32.mrb[26].mxu0  ;;  %2101 = vmatprep.subr.bf16.mxu1 %v689_v39 }
 0x2c5   :  { %v666_v47 = vmul.f32 0.8, %v2092_v44  ;;  %v627_v49 = vpop.f32.mrb[27].mxu0  ;;  %2102 = vmatpush3.bf16.msra.mxu1 %v689_v39  ;;  %v681_v41 = vadd.f32 %v665_v40, %v2673_v45 }
 0x2c6   :  { %v664_v54 = vmul.f32 0.8, %v627_v49  ;;  %2103 = vmatprep.subr.bf16.mxu1 %v690_v35  ;;  %v679_v63 = vadd.f32 %v663_v28, %v2679_v52 }
 0x2c7   :  { %v682_v62 = vadd.f32 %v666_v47, %v2670_v42 }
 0x2c8   :  { %v680_v43 = vadd.f32 %v664_v54, %v2676_v50 }
 0x2c9   :  { %2104 = vmatpush3.bf16.msra.mxu1 %v690_v35  ;;  %v692_v0 = vpack.c.bf16 %v682_v62, %v681_v41 }
 0x2ca   :  { %v2095_v2 = vpop.f32.mrb[28].mxu0  ;;  %v691_v3 = vpack.c.bf16 %v680_v43, %v679_v63 }
 0x2cb   :  { %v669_v5 = vmul.f32 0.8, %v2095_v2  ;;  %v640_v36 = vpop.f32.mrb[29].mxu0 }
 0x2cc   :  { %v667_v38 = vmul.f32 0.8, %v640_v36  ;;  %v2096_v9 = vpop.f32.mrb[30].mxu0  ;;  %2105 = vmatprep.subr.bf16.mxu1 %v691_v3 }
 0x2cd   :  { %v670_v11 = vmul.f32 0.8, %v2096_v9  ;;  %v643_v12 = vpop.f32.mrb[31].mxu0  ;;  %2106 = vmatpush3.bf16.msra.mxu1 %v691_v3  ;;  %v685_v51 = vadd.f32 %v669_v5, %v2689_v10 }
 0x2ce   :  { %v668_v17 = vmul.f32 0.8, %v643_v12  ;;  %2107 = vmatprep.subr.bf16.mxu1 %v692_v0  ;;  %v683_v20 = vadd.f32 %v667_v38, %v2695_v15 }
 0x2cf   :  { %v686_v19 = vadd.f32 %v670_v11, %v2686_v6 }
 0x2d0   :  { %v684_v53 = vadd.f32 %v668_v17, %v2692_v14 }
 0x2d1   :  { %2108 = vmatpush3.bf16.msra.mxu1 %v692_v0  ;;  %v694_v21 = vpack.c.bf16 %v686_v19, %v685_v51 }
 0x2d2   :  { %v693_v22 = vpack.c.bf16 %v684_v53, %v683_v20 }
 0x2d4   :  { %2109 = vmatprep.subr.bf16.mxu1 %v693_v22 }
 0x2d5   :  { %2110 = vmatpush3.bf16.msra.mxu1 %v693_v22 }
 0x2d6   :  { %2111 = vmatprep.subr.bf16.mxu1 %v694_v21 }
 0x2d9   :  { %2112 = vmatpush3.bf16.msra.mxu1 %v694_v21 }
 0x2dc   :  { %2114 = vmatmul.mubr.bf16.vlgmr.msra.gmra.mrb[16].mxu1 %v2597_v55 }
 0x2dd   :  { %2117 = vmatprep.mubr.bf16.mxu1 %v2602_v56 }
 0x2e4   :  { %2118 = vmatmul.mubr.bf16.gmra.mrb[20].mxu1 %v2609_v57 }
 0x2e5   :  { %2121 = vmatprep.mubr.bf16.mxu1 %v2614_v58 }
 0x2ec   :  { %2122 = vmatmul.mubr.bf16.gmra.mrb[24].mxu1 %v2621_v59 }
 0x2ed   :  { %2125 = vmatprep.mubr.bf16.mxu1 %v2626_v60 }
 0x2f4   :  { %2126 = vmatmul.mubr.bf16.gmra.mrb[28].mxu1 %v2633_v61 }
 0x2f5   :  { %2177 = vmatprep.mubr.bf16.mxu1 %v2539_v13 }
 0x3af   :  { %v2115_v46 = vpop.f32.mrb[16].mxu1 }
 0x3b0   :  { %v794_v48 = vmul.f32 0.8, %v2115_v46  ;;  %v729_v18 = vpop.f32.mrb[17].mxu1 }
 0x3b1   :  { %v792_v24 = vmul.f32 0.8, %v729_v18  ;;  %v2116_v25 = vpop.f32.mrb[18].mxu1 }
 0x3b2   :  { %v795_v30 = vmul.f32 0.8, %v2116_v25  ;;  %v732_v31 = vpop.f32.mrb[19].mxu1  ;;  %v810_v34 = vadd.f32 %v794_v48, %v2641_v4 }
 0x3b3   :  { %v793_v32 = vmul.f32 0.8, %v732_v31  ;;  %v808_v35 = vadd.f32 %v792_v24, %v2647_v8 }
 0x3b4   :  { %v811_v33 = vadd.f32 %v795_v30, %v2638_v1 }
 0x3b5   :  { %v809_v37 = vadd.f32 %v793_v32, %v2644_v7 }
 0x3b6   :  { %v825_v39 = vpack.c.bf16 %v811_v33, %v810_v34 }
 0x3b7   :  { %v2119_v40 = vpop.f32.mrb[20].mxu1  ;;  %v824_v26 = vpack.c.bf16 %v809_v37, %v808_v35 }
 0x3b8   :  { %v798_v28 = vmul.f32 0.8, %v2119_v40  ;;  %v745_v44 = vpop.f32.mrb[21].mxu1 }
 0x3b9   :  { %v796_v47 = vmul.f32 0.8, %v745_v44  ;;  %v2120_v49 = vpop.f32.mrb[22].mxu1  ;;  %2129 = vmatprep.subr.bf16.mxu0 %v824_v26 }
 0x3ba   :  { %v799_v54 = vmul.f32 0.8, %v2120_v49  ;;  %v748_v41 = vpop.f32.mrb[23].mxu1  ;;  %2130 = vmatpush3.bf16.msra.mxu0 %v824_v26  ;;  %v814_v63 = vadd.f32 %v798_v28, %v2657_v23 }
 0x3bb   :  { %v797_v62 = vmul.f32 0.8, %v748_v41  ;;  %2131 = vmatprep.subr.bf16.mxu0 %v825_v39  ;;  %v812_v0 = vadd.f32 %v796_v47, %v2663_v29 }
 0x3bc   :  { %v815_v43 = vadd.f32 %v799_v54, %v2654_v16 }
 0x3bd   :  { %v813_v2 = vadd.f32 %v797_v62, %v2660_v27 }
 0x3be   :  { %2132 = vmatpush3.bf16.msra.mxu0 %v825_v39  ;;  %v827_v3 = vpack.c.bf16 %v815_v43, %v814_v63 }
 0x3bf   :  { %v2123_v5 = vpop.f32.mrb[24].mxu1  ;;  %v826_v36 = vpack.c.bf16 %v813_v2, %v812_v0 }
 0x3c0   :  { %v802_v38 = vmul.f32 0.8, %v2123_v5  ;;  %v761_v9 = vpop.f32.mrb[25].mxu1 }
 0x3c1   :  { %v800_v11 = vmul.f32 0.8, %v761_v9  ;;  %v2124_v12 = vpop.f32.mrb[26].mxu1  ;;  %2133 = vmatprep.subr.bf16.mxu0 %v826_v36 }
 0x3c2   :  { %v803_v17 = vmul.f32 0.8, %v2124_v12  ;;  %v764_v51 = vpop.f32.mrb[27].mxu1  ;;  %2134 = vmatpush3.bf16.msra.mxu0 %v826_v36  ;;  %v818_v20 = vadd.f32 %v802_v38, %v2673_v45 }
 0x3c3   :  { %v801_v19 = vmul.f32 0.8, %v764_v51  ;;  %2135 = vmatprep.subr.bf16.mxu0 %v827_v3  ;;  %v816_v21 = vadd.f32 %v800_v11, %v2679_v52 }
 0x3c4   :  { %v819_v53 = vadd.f32 %v803_v17, %v2670_v42 }
 0x3c5   :  { %v817_v22 = vadd.f32 %v801_v19, %v2676_v50 }
 0x3c6   :  { %2136 = vmatpush3.bf16.msra.mxu0 %v827_v3  ;;  %v829_v46 = vpack.c.bf16 %v819_v53, %v818_v20 }
 0x3c7   :  { %v2127_v48 = vpop.f32.mrb[28].mxu1  ;;  %v828_v18 = vpack.c.bf16 %v817_v22, %v816_v21 }
 0x3c8   :  { %v806_v24 = vmul.f32 0.8, %v2127_v48  ;;  %v777_v25 = vpop.f32.mrb[29].mxu1 }
 0x3c9   :  { %v804_v30 = vmul.f32 0.8, %v777_v25  ;;  %v2128_v31 = vpop.f32.mrb[30].mxu1  ;;  %2137 = vmatprep.subr.bf16.mxu0 %v828_v18 }
 0x3ca   :  { %v807_v32 = vmul.f32 0.8, %v2128_v31  ;;  %v780_v34 = vpop.f32.mrb[31].mxu1  ;;  %2138 = vmatpush3.bf16.msra.mxu0 %v828_v18  ;;  %v822_v35 = vadd.f32 %v806_v24, %v2689_v10 }
 0x3cb   :  { %v805_v33 = vmul.f32 0.8, %v780_v34  ;;  %2139 = vmatprep.subr.bf16.mxu0 %v829_v46  ;;  %v820_v39 = vadd.f32 %v804_v30, %v2695_v15 }
 0x3cc   :  { %v823_v37 = vadd.f32 %v807_v32, %v2686_v6 }
 0x3cd   :  { %v821_v40 = vadd.f32 %v805_v33, %v2692_v14 }
 0x3ce   :  { %2140 = vmatpush3.bf16.msra.mxu0 %v829_v46  ;;  %v831_v26 = vpack.c.bf16 %v823_v37, %v822_v35 }
 0x3cf   :  { %v830_v28 = vpack.c.bf16 %v821_v40, %v820_v39 }
 0x3d1   :  { %2141 = vmatprep.subr.bf16.mxu0 %v830_v28 }
 0x3d2   :  { %2142 = vmatpush3.bf16.msra.mxu0 %v830_v28 }
 0x3d3   :  { %2143 = vmatprep.subr.bf16.mxu0 %v831_v26 }
 0x3d6   :  { %2144 = vmatpush3.bf16.msra.mxu0 %v831_v26 }
 0x3d9   :  { %2146 = vmatmul.mubr.bf16.vlgmr.msra.gmra.mrb[32].mxu0 %v2597_v55 }
 0x3da   :  { %2149 = vmatprep.mubr.bf16.mxu0 %v2602_v56 }
 0x3e1   :  { %2150 = vmatmul.mubr.bf16.gmra.mrb[36].mxu0 %v2609_v57 }
 0x3e2   :  { %2153 = vmatprep.mubr.bf16.mxu0 %v2614_v58 }
 0x3e9   :  { %2154 = vmatmul.mubr.bf16.gmra.mrb[40].mxu0 %v2621_v59 }
 0x3ea   :  { %2157 = vmatprep.mubr.bf16.mxu0 %v2626_v60 }
 0x3f1   :  { %2158 = vmatmul.mubr.bf16.gmra.mrb[44].mxu0 %v2633_v61 }
 0x3f2   :  { %2209 = vmatprep.mubr.bf16.mxu0 %v2539_v13 }
 0x4ac   :  { %v2147_v44 = vpop.f32.mrb[32].mxu0 }
 0x4ad   :  { %v931_v47 = vmul.f32 0.8, %v2147_v44  ;;  %v866_v49 = vpop.f32.mrb[33].mxu0 }
 0x4ae   :  { %v929_v54 = vmul.f32 0.8, %v866_v49  ;;  %v2148_v41 = vpop.f32.mrb[34].mxu0 }
 0x4af   :  { %v932_v62 = vmul.f32 0.8, %v2148_v41  ;;  %v869_v63 = vpop.f32.mrb[35].mxu0  ;;  %v947_v0 = vadd.f32 %v931_v47, %v2641_v4 }
 0x4b0   :  { %v930_v43 = vmul.f32 0.8, %v869_v63  ;;  %v945_v3 = vadd.f32 %v929_v54, %v2647_v8 }
 0x4b1   :  { %v948_v2 = vadd.f32 %v932_v62, %v2638_v1 }
 0x4b2   :  { %v946_v5 = vadd.f32 %v930_v43, %v2644_v7 }
 0x4b3   :  { %v962_v36 = vpack.c.bf16 %v948_v2, %v947_v0 }
 0x4b4   :  { %v2151_v38 = vpop.f32.mrb[36].mxu0  ;;  %v961_v9 = vpack.c.bf16 %v946_v5, %v945_v3 }
 0x4b5   :  { %v935_v11 = vmul.f32 0.8, %v2151_v38  ;;  %v882_v12 = vpop.f32.mrb[37].mxu0 }
 0x4b6   :  { %v933_v17 = vmul.f32 0.8, %v882_v12  ;;  %v2152_v51 = vpop.f32.mrb[38].mxu0  ;;  %2161 = vmatprep.subr.bf16.mxu1 %v961_v9 }
 0x4b7   :  { %v936_v19 = vmul.f32 0.8, %v2152_v51  ;;  %v885_v20 = vpop.f32.mrb[39].mxu0  ;;  %2162 = vmatpush3.bf16.msra.mxu1 %v961_v9  ;;  %v951_v21 = vadd.f32 %v935_v11, %v2657_v23 }
 0x4b8   :  { %v934_v53 = vmul.f32 0.8, %v885_v20  ;;  %2163 = vmatprep.subr.bf16.mxu1 %v962_v36  ;;  %v949_v46 = vadd.f32 %v933_v17, %v2663_v29 }
 0x4b9   :  { %v952_v22 = vadd.f32 %v936_v19, %v2654_v16 }
 0x4ba   :  { %v950_v48 = vadd.f32 %v934_v53, %v2660_v27 }
 0x4bb   :  { %2164 = vmatpush3.bf16.msra.mxu1 %v962_v36  ;;  %v964_v18 = vpack.c.bf16 %v952_v22, %v951_v21 }
 0x4bc   :  { %v2155_v24 = vpop.f32.mrb[40].mxu0  ;;  %v963_v25 = vpack.c.bf16 %v950_v48, %v949_v46 }
 0x4bd   :  { %v939_v30 = vmul.f32 0.8, %v2155_v24  ;;  %v898_v31 = vpop.f32.mrb[41].mxu0 }
 0x4be   :  { %v937_v32 = vmul.f32 0.8, %v898_v31  ;;  %v2156_v34 = vpop.f32.mrb[42].mxu0  ;;  %2165 = vmatprep.subr.bf16.mxu1 %v963_v25 }
 0x4bf   :  { %v940_v33 = vmul.f32 0.8, %v2156_v34  ;;  %v901_v35 = vpop.f32.mrb[43].mxu0  ;;  %2166 = vmatpush3.bf16.msra.mxu1 %v963_v25  ;;  %v955_v39 = vadd.f32 %v939_v30, %v2673_v45 }
 0x4c0   :  { %v938_v37 = vmul.f32 0.8, %v901_v35  ;;  %2167 = vmatprep.subr.bf16.mxu1 %v964_v18  ;;  %v953_v26 = vadd.f32 %v937_v32, %v2679_v52 }
 0x4c1   :  { %v956_v40 = vadd.f32 %v940_v33, %v2670_v42 }
 0x4c2   :  { %v954_v28 = vadd.f32 %v938_v37, %v2676_v50 }
 0x4c3   :  { %2168 = vmatpush3.bf16.msra.mxu1 %v964_v18  ;;  %v966_v44 = vpack.c.bf16 %v956_v40, %v955_v39 }
 0x4c4   :  { %v2159_v47 = vpop.f32.mrb[44].mxu0  ;;  %v965_v49 = vpack.c.bf16 %v954_v28, %v953_v26 }
 0x4c5   :  { %v943_v54 = vmul.f32 0.8, %v2159_v47  ;;  %v914_v41 = vpop.f32.mrb[45].mxu0 }
 0x4c6   :  { %v941_v62 = vmul.f32 0.8, %v914_v41  ;;  %v2160_v63 = vpop.f32.mrb[46].mxu0  ;;  %2169 = vmatprep.subr.bf16.mxu1 %v965_v49 }
 0x4c7   :  { %v944_v43 = vmul.f32 0.8, %v2160_v63  ;;  %v917_v0 = vpop.f32.mrb[47].mxu0  ;;  %2170 = vmatpush3.bf16.msra.mxu1 %v965_v49  ;;  %v959_v3 = vadd.f32 %v943_v54, %v2689_v10 }
 0x4c8   :  { %v942_v2 = vmul.f32 0.8, %v917_v0  ;;  %2171 = vmatprep.subr.bf16.mxu1 %v966_v44  ;;  %v957_v36 = vadd.f32 %v941_v62, %v2695_v15 }
 0x4c9   :  { %v960_v5 = vadd.f32 %v944_v43, %v2686_v6 }
 0x4ca   :  { %v958_v38 = vadd.f32 %v942_v2, %v2692_v14 }
 0x4cb   :  { %2172 = vmatpush3.bf16.msra.mxu1 %v966_v44  ;;  %v968_v9 = vpack.c.bf16 %v960_v5, %v959_v3 }
 0x4cc   :  { %v967_v11 = vpack.c.bf16 %v958_v38, %v957_v36 }
 0x4ce   :  { %2173 = vmatprep.subr.bf16.mxu1 %v967_v11 }
 0x4cf   :  { %2174 = vmatpush3.bf16.msra.mxu1 %v967_v11 }
 0x4d0   :  { %2175 = vmatprep.subr.bf16.mxu1 %v968_v9 }
 0x4d3   :  { %2176 = vmatpush3.bf16.msra.mxu1 %v968_v9 }
 0x4d6   :  { %2178 = vmatmul.mubr.bf16.vlgmr.msra.gmra.mrb[32].mxu1 %v2597_v55 }
 0x4d7   :  { %2181 = vmatprep.mubr.bf16.mxu1 %v2602_v56 }
 0x4de   :  { %2182 = vmatmul.mubr.bf16.gmra.mrb[36].mxu1 %v2609_v57 }
 0x4df   :  { %2185 = vmatprep.mubr.bf16.mxu1 %v2614_v58 }
 0x4e6   :  { %2186 = vmatmul.mubr.bf16.gmra.mrb[40].mxu1 %v2621_v59 }
 0x4e7   :  { %2189 = vmatprep.mubr.bf16.mxu1 %v2626_v60 }
 0x4ee   :  { %2190 = vmatmul.mubr.bf16.gmra.mrb[44].mxu1 %v2633_v61 }
 0x4ef   :  { %2241 = vmatprep.mubr.bf16.mxu1 %v2539_v13 }
 0x5a9   :  { %v2179_v12 = vpop.f32.mrb[32].mxu1 }
 0x5aa   :  { %v1068_v17 = vmul.f32 0.8, %v2179_v12  ;;  %v1003_v51 = vpop.f32.mrb[33].mxu1 }
 0x5ab   :  { %v1066_v19 = vmul.f32 0.8, %v1003_v51  ;;  %v2180_v20 = vpop.f32.mrb[34].mxu1 }
 0x5ac   :  { %v1069_v53 = vmul.f32 0.8, %v2180_v20  ;;  %v1006_v21 = vpop.f32.mrb[35].mxu1  ;;  %v1084_v46 = vadd.f32 %v1068_v17, %v2641_v4 }
 0x5ad   :  { %v1067_v22 = vmul.f32 0.8, %v1006_v21  ;;  %v1082_v18 = vadd.f32 %v1066_v19, %v2647_v8 }
 0x5ae   :  { %v1085_v48 = vadd.f32 %v1069_v53, %v2638_v1 }
 0x5af   :  { %v1083_v24 = vadd.f32 %v1067_v22, %v2644_v7 }
 0x5b0   :  { %v1099_v25 = vpack.c.bf16 %v1085_v48, %v1084_v46 }
 0x5b1   :  { %v2183_v30 = vpop.f32.mrb[36].mxu1  ;;  %v1098_v31 = vpack.c.bf16 %v1083_v24, %v1082_v18 }
 0x5b2   :  { %v1072_v32 = vmul.f32 0.8, %v2183_v30  ;;  %v1019_v34 = vpop.f32.mrb[37].mxu1 }
 0x5b3   :  { %v1070_v33 = vmul.f32 0.8, %v1019_v34  ;;  %v2184_v35 = vpop.f32.mrb[38].mxu1  ;;  %2193 = vmatprep.subr.bf16.mxu0 %v1098_v31 }
 0x5b4   :  { %v1073_v37 = vmul.f32 0.8, %v2184_v35  ;;  %v1022_v39 = vpop.f32.mrb[39].mxu1  ;;  %2194 = vmatpush3.bf16.msra.mxu0 %v1098_v31  ;;  %v1088_v26 = vadd.f32 %v1072_v32, %v2657_v23 }
 0x5b5   :  { %v1071_v40 = vmul.f32 0.8, %v1022_v39  ;;  %2195 = vmatprep.subr.bf16.mxu0 %v1099_v25  ;;  %v1086_v44 = vadd.f32 %v1070_v33, %v2663_v29 }
 0x5b6   :  { %v1089_v28 = vadd.f32 %v1073_v37, %v2654_v16 }
 0x5b7   :  { %v1087_v47 = vadd.f32 %v1071_v40, %v2660_v27 }
 0x5b8   :  { %2196 = vmatpush3.bf16.msra.mxu0 %v1099_v25  ;;  %v1101_v49 = vpack.c.bf16 %v1089_v28, %v1088_v26 }
 0x5b9   :  { %v2187_v54 = vpop.f32.mrb[40].mxu1  ;;  %v1100_v41 = vpack.c.bf16 %v1087_v47, %v1086_v44 }
 0x5ba   :  { %v1076_v62 = vmul.f32 0.8, %v2187_v54  ;;  %v1035_v63 = vpop.f32.mrb[41].mxu1 }
 0x5bb   :  { %v1074_v43 = vmul.f32 0.8, %v1035_v63  ;;  %v2188_v0 = vpop.f32.mrb[42].mxu1  ;;  %2197 = vmatprep.subr.bf16.mxu0 %v1100_v41 }
 0x5bc   :  { %v1077_v2 = vmul.f32 0.8, %v2188_v0  ;;  %v1038_v3 = vpop.f32.mrb[43].mxu1  ;;  %2198 = vmatpush3.bf16.msra.mxu0 %v1100_v41  ;;  %v1092_v36 = vadd.f32 %v1076_v62, %v2673_v45 }
 0x5bd   :  { %v1075_v5 = vmul.f32 0.8, %v1038_v3  ;;  %2199 = vmatprep.subr.bf16.mxu0 %v1101_v49  ;;  %v1090_v9 = vadd.f32 %v1074_v43, %v2679_v52 }
 0x5be   :  { %v1093_v38 = vadd.f32 %v1077_v2, %v2670_v42 }
 0x5bf   :  { %v1091_v11 = vadd.f32 %v1075_v5, %v2676_v50 }
 0x5c0   :  { %2200 = vmatpush3.bf16.msra.mxu0 %v1101_v49  ;;  %v1103_v12 = vpack.c.bf16 %v1093_v38, %v1092_v36 }
 0x5c1   :  { %v2191_v17 = vpop.f32.mrb[44].mxu1  ;;  %v1102_v51 = vpack.c.bf16 %v1091_v11, %v1090_v9 }
 0x5c2   :  { %v1080_v19 = vmul.f32 0.8, %v2191_v17  ;;  %v1051_v20 = vpop.f32.mrb[45].mxu1 }
 0x5c3   :  { %v1078_v53 = vmul.f32 0.8, %v1051_v20  ;;  %v2192_v21 = vpop.f32.mrb[46].mxu1  ;;  %2201 = vmatprep.subr.bf16.mxu0 %v1102_v51 }
 0x5c4   :  { %v1081_v22 = vmul.f32 0.8, %v2192_v21  ;;  %v1054_v46 = vpop.f32.mrb[47].mxu1  ;;  %2202 = vmatpush3.bf16.msra.mxu0 %v1102_v51  ;;  %v1096_v18 = vadd.f32 %v1080_v19, %v2689_v10 }
 0x5c5   :  { %v1079_v48 = vmul.f32 0.8, %v1054_v46  ;;  %2203 = vmatprep.subr.bf16.mxu0 %v1103_v12  ;;  %v1094_v25 = vadd.f32 %v1078_v53, %v2695_v15 }
 0x5c6   :  { %v1097_v24 = vadd.f32 %v1081_v22, %v2686_v6 }
 0x5c7   :  { %v1095_v30 = vadd.f32 %v1079_v48, %v2692_v14 }
 0x5c8   :  { %2204 = vmatpush3.bf16.msra.mxu0 %v1103_v12  ;;  %v1105_v31 = vpack.c.bf16 %v1097_v24, %v1096_v18 }
 0x5c9   :  { %v1104_v32 = vpack.c.bf16 %v1095_v30, %v1094_v25 }
 0x5cb   :  { %2205 = vmatprep.subr.bf16.mxu0 %v1104_v32 }
 0x5cc   :  { %2206 = vmatpush3.bf16.msra.mxu0 %v1104_v32 }
 0x5cd   :  { %2207 = vmatprep.subr.bf16.mxu0 %v1105_v31 }
 0x5d0   :  { %2208 = vmatpush3.bf16.msra.mxu0 %v1105_v31 }
 0x5d3   :  { %2210 = vmatmul.mubr.bf16.vlgmr.msra.gmra.mrb[48].mxu0 %v2597_v55 }
 0x5d4   :  { %2213 = vmatprep.mubr.bf16.mxu0 %v2602_v56 }
 0x5db   :  { %2214 = vmatmul.mubr.bf16.gmra.mrb[52].mxu0 %v2609_v57 }
 0x5dc   :  { %2217 = vmatprep.mubr.bf16.mxu0 %v2614_v58 }
 0x5e3   :  { %2218 = vmatmul.mubr.bf16.gmra.mrb[56].mxu0 %v2621_v59 }
 0x5e4   :  { %2221 = vmatprep.mubr.bf16.mxu0 %v2626_v60 }
 0x5eb   :  { %2222 = vmatmul.mubr.bf16.gmra.mrb[60].mxu0 %v2633_v61 }
 0x5ec   :  { %2273 = vmatprep.mubr.bf16.mxu0 %v2539_v13 }
 0x6a6   :  { %v2211_v34 = vpop.f32.mrb[48].mxu0 }
 0x6a7   :  { %v1205_v33 = vmul.f32 0.8, %v2211_v34  ;;  %v1140_v35 = vpop.f32.mrb[49].mxu0 }
 0x6a8   :  { %v1203_v37 = vmul.f32 0.8, %v1140_v35  ;;  %v2212_v39 = vpop.f32.mrb[50].mxu0 }
 0x6a9   :  { %v1206_v40 = vmul.f32 0.8, %v2212_v39  ;;  %v1143_v26 = vpop.f32.mrb[51].mxu0  ;;  %v1221_v44 = vadd.f32 %v1205_v33, %v2641_v4 }
 0x6aa   :  { %v1204_v28 = vmul.f32 0.8, %v1143_v26  ;;  %v1219_v49 = vadd.f32 %v1203_v37, %v2647_v8 }
 0x6ab   :  { %v1222_v47 = vadd.f32 %v1206_v40, %v2638_v1 }
 0x6ac   :  { %v1220_v54 = vadd.f32 %v1204_v28, %v2644_v7 }
 0x6ad   :  { %v1236_v41 = vpack.c.bf16 %v1222_v47, %v1221_v44 }
 0x6ae   :  { %v2215_v62 = vpop.f32.mrb[52].mxu0  ;;  %v1235_v63 = vpack.c.bf16 %v1220_v54, %v1219_v49 }
 0x6af   :  { %v1209_v43 = vmul.f32 0.8, %v2215_v62  ;;  %v1156_v0 = vpop.f32.mrb[53].mxu0 }
 0x6b0   :  { %v1207_v2 = vmul.f32 0.8, %v1156_v0  ;;  %v2216_v3 = vpop.f32.mrb[54].mxu0  ;;  %2225 = vmatprep.subr.bf16.mxu1 %v1235_v63 }
 0x6b1   :  { %v1210_v5 = vmul.f32 0.8, %v2216_v3  ;;  %v1159_v36 = vpop.f32.mrb[55].mxu0  ;;  %2226 = vmatpush3.bf16.msra.mxu1 %v1235_v63  ;;  %v1225_v9 = vadd.f32 %v1209_v43, %v2657_v23 }
 0x6b2   :  { %v1208_v38 = vmul.f32 0.8, %v1159_v36  ;;  %2227 = vmatprep.subr.bf16.mxu1 %v1236_v41  ;;  %v1223_v12 = vadd.f32 %v1207_v2, %v2663_v29 }
 0x6b3   :  { %v1226_v11 = vadd.f32 %v1210_v5, %v2654_v16 }
 0x6b4   :  { %v1224_v17 = vadd.f32 %v1208_v38, %v2660_v27 }
 0x6b5   :  { %2228 = vmatpush3.bf16.msra.mxu1 %v1236_v41  ;;  %v1238_v51 = vpack.c.bf16 %v1226_v11, %v1225_v9 }
 0x6b6   :  { %v2219_v19 = vpop.f32.mrb[56].mxu0  ;;  %v1237_v20 = vpack.c.bf16 %v1224_v17, %v1223_v12 }
 0x6b7   :  { %v1213_v53 = vmul.f32 0.8, %v2219_v19  ;;  %v1172_v21 = vpop.f32.mrb[57].mxu0 }
 0x6b8   :  { %v1211_v22 = vmul.f32 0.8, %v1172_v21  ;;  %v2220_v46 = vpop.f32.mrb[58].mxu0  ;;  %2229 = vmatprep.subr.bf16.mxu1 %v1237_v20 }
 0x6b9   :  { %v1214_v48 = vmul.f32 0.8, %v2220_v46  ;;  %v1175_v18 = vpop.f32.mrb[59].mxu0  ;;  %2230 = vmatpush3.bf16.msra.mxu1 %v1237_v20  ;;  %v1229_v25 = vadd.f32 %v1213_v53, %v2673_v45 }
 0x6ba   :  { %v1212_v24 = vmul.f32 0.8, %v1175_v18  ;;  %2231 = vmatprep.subr.bf16.mxu1 %v1238_v51  ;;  %v1227_v31 = vadd.f32 %v1211_v22, %v2679_v52 }
 0x6bb   :  { %v1230_v30 = vadd.f32 %v1214_v48, %v2670_v42 }
 0x6bc   :  { %v1228_v32 = vadd.f32 %v1212_v24, %v2676_v50 }
 0x6bd   :  { %2232 = vmatpush3.bf16.msra.mxu1 %v1238_v51  ;;  %v1240_v34 = vpack.c.bf16 %v1230_v30, %v1229_v25 }
 0x6be   :  { %v2223_v33 = vpop.f32.mrb[60].mxu0  ;;  %v1239_v35 = vpack.c.bf16 %v1228_v32, %v1227_v31 }
 0x6bf   :  { %v1217_v37 = vmul.f32 0.8, %v2223_v33  ;;  %v1188_v39 = vpop.f32.mrb[61].mxu0 }
 0x6c0   :  { %v1215_v40 = vmul.f32 0.8, %v1188_v39  ;;  %v2224_v26 = vpop.f32.mrb[62].mxu0  ;;  %2233 = vmatprep.subr.bf16.mxu1 %v1239_v35 }
 0x6c1   :  { %v1218_v28 = vmul.f32 0.8, %v2224_v26  ;;  %v1191_v44 = vpop.f32.mrb[63].mxu0  ;;  %2234 = vmatpush3.bf16.msra.mxu1 %v1239_v35  ;;  %v1233_v49 = vadd.f32 %v1217_v37, %v2689_v10 }
 0x6c2   :  { %v1216_v47 = vmul.f32 0.8, %v1191_v44  ;;  %2235 = vmatprep.subr.bf16.mxu1 %v1240_v34  ;;  %v1231_v41 = vadd.f32 %v1215_v40, %v2695_v15 }
 0x6c3   :  { %v1234_v54 = vadd.f32 %v1218_v28, %v2686_v6 }
 0x6c4   :  { %v1232_v62 = vadd.f32 %v1216_v47, %v2692_v14 }
 0x6c5   :  { %2236 = vmatpush3.bf16.msra.mxu1 %v1240_v34  ;;  %v1242_v63 = vpack.c.bf16 %v1234_v54, %v1233_v49 }
 0x6c6   :  { %v1241_v43 = vpack.c.bf16 %v1232_v62, %v1231_v41 }
 0x6c8   :  { %2237 = vmatprep.subr.bf16.mxu1 %v1241_v43 }
 0x6c9   :  { %2238 = vmatpush3.bf16.msra.mxu1 %v1241_v43 }
 0x6ca   :  { %2239 = vmatprep.subr.bf16.mxu1 %v1242_v63 }
 0x6cd   :  { %2240 = vmatpush3.bf16.msra.mxu1 %v1242_v63 }
 0x6d0   :  { %2242 = vmatmul.mubr.bf16.vlgmr.msra.gmra.mrb[48].mxu1 %v2597_v55 }
 0x6d1   :  { %2245 = vmatprep.mubr.bf16.mxu1 %v2602_v56 }
 0x6d8   :  { %2246 = vmatmul.mubr.bf16.gmra.mrb[52].mxu1 %v2609_v57 }
 0x6d9   :  { %2249 = vmatprep.mubr.bf16.mxu1 %v2614_v58 }
 0x6e0   :  { %2250 = vmatmul.mubr.bf16.gmra.mrb[56].mxu1 %v2621_v59 }
 0x6e1   :  { %2253 = vmatprep.mubr.bf16.mxu1 %v2626_v60 }
 0x6e8   :  { %2254 = vmatmul.mubr.bf16.gmra.mrb[60].mxu1 %v2633_v61 }
 0x6e9   :  { %2305 = vmatprep.mubr.bf16.mxu1 %v2539_v13 }
 0x7a3   :  { %v2243_v0 = vpop.f32.mrb[48].mxu1 }
 0x7a4   :  { %v1342_v2 = vmul.f32 0.8, %v2243_v0  ;;  %v1277_v3 = vpop.f32.mrb[49].mxu1 }
 0x7a5   :  { %v1340_v5 = vmul.f32 0.8, %v1277_v3  ;;  %v2244_v36 = vpop.f32.mrb[50].mxu1 }
 0x7a6   :  { %v1343_v38 = vmul.f32 0.8, %v2244_v36  ;;  %v1280_v9 = vpop.f32.mrb[51].mxu1  ;;  %v1358_v12 = vadd.f32 %v1342_v2, %v2641_v4 }
 0x7a7   :  { %v1341_v11 = vmul.f32 0.8, %v1280_v9  ;;  %v1356_v51 = vadd.f32 %v1340_v5, %v2647_v8 }
 0x7a8   :  { %v1359_v17 = vadd.f32 %v1343_v38, %v2638_v1 }
 0x7a9   :  { %v1357_v19 = vadd.f32 %v1341_v11, %v2644_v7 }
 0x7aa   :  { %v1373_v20 = vpack.c.bf16 %v1359_v17, %v1358_v12 }
 0x7ab   :  { %v2247_v53 = vpop.f32.mrb[52].mxu1  ;;  %v1372_v21 = vpack.c.bf16 %v1357_v19, %v1356_v51 }
 0x7ac   :  { %v1346_v13 = vmul.f32 0.8, %v2247_v53  ;;  %v1293_v22 = vpop.f32.mrb[53].mxu1 }
 0x7ad   :  { %v1344_v46 = vmul.f32 0.8, %v1293_v22  ;;  %v2248_v48 = vpop.f32.mrb[54].mxu1  ;;  %2257 = vmatprep.subr.bf16.mxu0 %v1372_v21 }
 0x7ae   :  { %v1347_v18 = vmul.f32 0.8, %v2248_v48  ;;  %v1296_v24 = vpop.f32.mrb[55].mxu1  ;;  %2258 = vmatpush3.bf16.msra.mxu0 %v1372_v21  ;;  %v1362_v30 = vadd.f32 %v1346_v13, %v2657_v23 }
 0x7af   :  { %v1345_v25 = vmul.f32 0.8, %v1296_v24  ;;  %2259 = vmatprep.subr.bf16.mxu0 %v1373_v20  ;;  %v1360_v32 = vadd.f32 %v1344_v46, %v2663_v29 }
 0x7b0   :  { %v1363_v31 = vadd.f32 %v1347_v18, %v2654_v16 }
 0x7b1   :  { %v1361_v34 = vadd.f32 %v1345_v25, %v2660_v27 }
 0x7b2   :  { %2260 = vmatpush3.bf16.msra.mxu0 %v1373_v20  ;;  %v1375_v33 = vpack.c.bf16 %v1363_v31, %v1362_v30 }
 0x7b3   :  { %v2251_v35 = vpop.f32.mrb[56].mxu1  ;;  %v1374_v37 = vpack.c.bf16 %v1361_v34, %v1360_v32 }
 0x7b4   :  { %v1350_v39 = vmul.f32 0.8, %v2251_v35  ;;  %v1309_v40 = vpop.f32.mrb[57].mxu1 }
 0x7b5   :  { %v1348_v26 = vmul.f32 0.8, %v1309_v40  ;;  %v2252_v28 = vpop.f32.mrb[58].mxu1  ;;  %2261 = vmatprep.subr.bf16.mxu0 %v1374_v37 }
 0x7b6   :  { %v1351_v44 = vmul.f32 0.8, %v2252_v28  ;;  %v1312_v47 = vpop.f32.mrb[59].mxu1  ;;  %2262 = vmatpush3.bf16.msra.mxu0 %v1374_v37  ;;  %v1366_v54 = vadd.f32 %v1350_v39, %v2673_v45 }
 0x7b7   :  { %v1349_v49 = vmul.f32 0.8, %v1312_v47  ;;  %2263 = vmatprep.subr.bf16.mxu0 %v1375_v33  ;;  %v1364_v62 = vadd.f32 %v1348_v26, %v2679_v52 }
 0x7b8   :  { %v1367_v41 = vadd.f32 %v1351_v44, %v2670_v42 }
 0x7b9   :  { %v1365_v63 = vadd.f32 %v1349_v49, %v2676_v50 }
 0x7ba   :  { %2264 = vmatpush3.bf16.msra.mxu0 %v1375_v33  ;;  %v1377_v43 = vpack.c.bf16 %v1367_v41, %v1366_v54 }
 0x7bb   :  { %v2255_v0 = vpop.f32.mrb[60].mxu1  ;;  %v1376_v2 = vpack.c.bf16 %v1365_v63, %v1364_v62 }
 0x7bc   :  { %v1354_v3 = vmul.f32 0.8, %v2255_v0  ;;  %v1325_v5 = vpop.f32.mrb[61].mxu1 }
 0x7bd   :  { %v1352_v36 = vmul.f32 0.8, %v1325_v5  ;;  %v2256_v38 = vpop.f32.mrb[62].mxu1  ;;  %2265 = vmatprep.subr.bf16.mxu0 %v1376_v2 }
 0x7be   :  { %v1355_v9 = vmul.f32 0.8, %v2256_v38  ;;  %v1328_v11 = vpop.f32.mrb[63].mxu1  ;;  %2266 = vmatpush3.bf16.msra.mxu0 %v1376_v2  ;;  %v1370_v17 = vadd.f32 %v1354_v3, %v2689_v10 }
 0x7bf   :  { %v1353_v12 = vmul.f32 0.8, %v1328_v11  ;;  %2267 = vmatprep.subr.bf16.mxu0 %v1377_v43  ;;  %v1368_v19 = vadd.f32 %v1352_v36, %v2695_v15 }
 0x7c0   :  { %v1371_v51 = vadd.f32 %v1355_v9, %v2686_v6 }
 0x7c1   :  { %v1369_v20 = vadd.f32 %v1353_v12, %v2692_v14 }
 0x7c2   :  { %2268 = vmatpush3.bf16.msra.mxu0 %v1377_v43  ;;  %v1379_v53 = vpack.c.bf16 %v1371_v51, %v1370_v17 }
 0x7c3   :  { %v1378_v21 = vpack.c.bf16 %v1369_v20, %v1368_v19 }
 0x7c5   :  { %2269 = vmatprep.subr.bf16.mxu0 %v1378_v21 }
 0x7c6   :  { %2270 = vmatpush3.bf16.msra.mxu0 %v1378_v21 }
 0x7c7   :  { %2271 = vmatprep.subr.bf16.mxu0 %v1379_v53 }
 0x7ca   :  { %2272 = vmatpush3.bf16.msra.mxu0 %v1379_v53 }
 0x7cd   :  { %2274 = vmatmul.mubr.bf16.vlgmr.msra.gmra.mrb[64].mxu0 %v2597_v55 }
 0x7ce   :  { %2277 = vmatprep.mubr.bf16.mxu0 %v2602_v56 }
 0x7d5   :  { %2278 = vmatmul.mubr.bf16.gmra.mrb[68].mxu0 %v2609_v57 }
 0x7d6   :  { %2281 = vmatprep.mubr.bf16.mxu0 %v2614_v58 }
 0x7dd   :  { %2282 = vmatmul.mubr.bf16.gmra.mrb[72].mxu0 %v2621_v59 }
 0x7de   :  { %2285 = vmatprep.mubr.bf16.mxu0 %v2626_v60 }
 0x7e5   :  { %2286 = vmatmul.mubr.bf16.gmra.mrb[76].mxu0 %v2633_v61 }
 0x8a0   :  { %v2275_v13 = vpop.f32.mrb[64].mxu0 }
 0x8a1   :  { %v1479_v22 = vmul.f32 0.8, %v2275_v13  ;;  %v1414_v46 = vpop.f32.mrb[65].mxu0 }
 0x8a2   :  { %v1477_v48 = vmul.f32 0.8, %v1414_v46  ;;  %v2276_v18 = vpop.f32.mrb[66].mxu0 }
 0x8a3   :  { %v1480_v24 = vmul.f32 0.8, %v2276_v18  ;;  %v1417_v25 = vpop.f32.mrb[67].mxu0  ;;  %v1495_v56 = vadd.f32 %v1479_v22, %v2641_v4 }
 0x8a4   :  { %v1478_v55 = vmul.f32 0.8, %v1417_v25  ;;  %v1493_v58 = vadd.f32 %v1477_v48, %v2647_v8 }
 0x8a5   :  { %v1496_v57 = vadd.f32 %v1480_v24, %v2638_v1 }
 0x8a6   :  { %v1494_v59 = vadd.f32 %v1478_v55, %v2644_v7 }
 0x8a7   :  { %v1510_v30 = vpack.c.bf16 %v1496_v57, %v1495_v56  ;;  %v2377_v56 = vld [vmem:[%s3114_s0 + $0x8] sm:$0xff]   ;;  %v2378_v57 = vld [vmem:[%s3114_s0 + $0x10] sm:$0xff]  }
 0x8a8   :  { %v2279_v60 = vpop.f32.mrb[68].mxu0  ;;  %v1509_v31 = vpack.c.bf16 %v1494_v59, %v1493_v58  ;;  %v2379_v58 = vld [vmem:[%s3114_s0 + $0x18] sm:$0xff]   ;;  %v2380_v59 = vld [vmem:[%s3114_s0 + $0x20] sm:$0xff]  }
 0x8a9   :  { %v1483_v61 = vmul.f32 0.8, %v2279_v60  ;;  %v1430_v32 = vpop.f32.mrb[69].mxu0  ;;  %v2382_v60 = vld [vmem:[%s3114_s0 + $0x30] sm:$0xff]  }
 0x8aa   :  { %v1481_v34 = vmul.f32 0.8, %v1430_v32  ;;  %v2280_v33 = vpop.f32.mrb[70].mxu0  ;;  %2289 = vmatprep.subr.bf16.mxu1 %v1509_v31 }
 0x8ab   :  { %v1484_v35 = vmul.f32 0.8, %v2280_v33  ;;  %v1433_v37 = vpop.f32.mrb[71].mxu0  ;;  %2290 = vmatpush3.bf16.msra.mxu1 %v1509_v31  ;;  %v1499_v40 = vadd.f32 %v1483_v61, %v2657_v23  ;;  %v2383_v31 = vld [vmem:[%s3114_s0 + $0x38] sm:$0xff]  }
 0x8ac   :  { %v1482_v39 = vmul.f32 0.8, %v1433_v37  ;;  %2291 = vmatprep.subr.bf16.mxu1 %v1510_v30  ;;  %v1497_v28 = vadd.f32 %v1481_v34, %v2663_v29  ;;  %v2868_v37 = vld [vmem:[%s3116_s6] ss:$0 sm:$0xff] }
 0x8ad   :  { %v1500_v26 = vadd.f32 %v1484_v35, %v2654_v16 }
 0x8ae   :  { %v1498_v44 = vadd.f32 %v1482_v39, %v2660_v27 }
 0x8af   :  { %2292 = vmatpush3.bf16.msra.mxu1 %v1510_v30  ;;  %v1512_v47 = vpack.c.bf16 %v1500_v26, %v1499_v40  ;;  %v2381_v30 = vld [vmem:[%s3114_s0 + $0x28] sm:$0xff]  }
 0x8b0   :  { %v2283_v49 = vpop.f32.mrb[72].mxu0  ;;  %v1511_v54 = vpack.c.bf16 %v1498_v44, %v1497_v28 }
 0x8b1   :  { %v1487_v41 = vmul.f32 0.8, %v2283_v49  ;;  %v1446_v62 = vpop.f32.mrb[73].mxu0 }
 0x8b2   :  { %v1485_v63 = vmul.f32 0.8, %v1446_v62  ;;  %v2284_v43 = vpop.f32.mrb[74].mxu0  ;;  %2293 = vmatprep.subr.bf16.mxu1 %v1511_v54 }
 0x8b3   :  { %v1488_v0 = vmul.f32 0.8, %v2284_v43  ;;  %v1449_v2 = vpop.f32.mrb[75].mxu0  ;;  %2294 = vmatpush3.bf16.msra.mxu1 %v1511_v54  ;;  %v1503_v5 = vadd.f32 %v1487_v41, %v2673_v45 }
 0x8b4   :  { %v1486_v3 = vmul.f32 0.8, %v1449_v2  ;;  %2295 = vmatprep.subr.bf16.mxu1 %v1512_v47  ;;  %v1501_v38 = vadd.f32 %v1485_v63, %v2679_v52 }
 0x8b5   :  { %v1504_v36 = vadd.f32 %v1488_v0, %v2670_v42 }
 0x8b6   :  { %v1502_v9 = vadd.f32 %v1486_v3, %v2676_v50 }
 0x8b7   :  { %2296 = vmatpush3.bf16.msra.mxu1 %v1512_v47  ;;  %v1514_v11 = vpack.c.bf16 %v1504_v36, %v1503_v5 }
 0x8b8   :  { %v2287_v12 = vpop.f32.mrb[76].mxu0  ;;  %v1513_v17 = vpack.c.bf16 %v1502_v9, %v1501_v38 }
 0x8b9   :  { %v1491_v51 = vmul.f32 0.8, %v2287_v12  ;;  %v1462_v19 = vpop.f32.mrb[77].mxu0 }
 0x8ba   :  { %v1489_v20 = vmul.f32 0.8, %v1462_v19  ;;  %v2288_v53 = vpop.f32.mrb[78].mxu0  ;;  %2297 = vmatprep.subr.bf16.mxu1 %v1513_v17 }
 0x8bb   :  { %v1492_v21 = vmul.f32 0.8, %v2288_v53  ;;  %v1465_v13 = vpop.f32.mrb[79].mxu0  ;;  %2298 = vmatpush3.bf16.msra.mxu1 %v1513_v17  ;;  %v1507_v46 = vadd.f32 %v1491_v51, %v2689_v10 }
 0x8bc   :  { %v1490_v22 = vmul.f32 0.8, %v1465_v13  ;;  %2299 = vmatprep.subr.bf16.mxu1 %v1514_v11  ;;  %v1505_v18 = vadd.f32 %v1489_v20, %v2695_v15 }
 0x8bd   :  { %v1508_v48 = vadd.f32 %v1492_v21, %v2686_v6 }
 0x8be   :  { %v1506_v24 = vadd.f32 %v1490_v22, %v2692_v14 }
 0x8bf   :  { %2300 = vmatpush3.bf16.msra.mxu1 %v1514_v11  ;;  %v1516_v25 = vpack.c.bf16 %v1508_v48, %v1507_v46 }
 0x8c0   :  { %v1515_v55 = vpack.c.bf16 %v1506_v24, %v1505_v18 }
 0x8c2   :  { %2301 = vmatprep.subr.bf16.mxu1 %v1515_v55 }
 0x8c3   :  { %2302 = vmatpush3.bf16.msra.mxu1 %v1515_v55 }
 0x8c4   :  { %2303 = vmatprep.subr.bf16.mxu1 %v1516_v25 }
 0x8c7   :  { %2304 = vmatpush3.bf16.msra.mxu1 %v1516_v25 }
 0x8ca   :  { %2306 = vmatmul.mubr.bf16.vlgmr.msra.gmra.mrb[64].mxu1 %v2377_v56 }
 0x8cb   :  { %2309 = vmatprep.mubr.bf16.mxu1 %v2378_v57 }
 0x8d2   :  { %2310 = vmatmul.mubr.bf16.gmra.mrb[68].mxu1 %v2379_v58 }
 0x8d3   :  { %2313 = vmatprep.mubr.bf16.mxu1 %v2380_v59 }
 0x8da   :  { %2314 = vmatmul.mubr.bf16.gmra.mrb[72].mxu1 %v2381_v30 }
 0x8db   :  { %2317 = vmatprep.mubr.bf16.mxu1 %v2382_v60 }
 0x8e2   :  { %2318 = vmatmul.mubr.bf16.gmra.mrb[76].mxu1 %v2383_v31 }
 0x99d   :  { %v2307_v61 = vpop.f32.mrb[64].mxu1 }
 0x99e   :  { %v1616_v32 = vmul.f32 0.8, %v2307_v61  ;;  %v1551_v34 = vpop.f32.mrb[65].mxu1 }
 0x99f   :  { %v1614_v33 = vmul.f32 0.8, %v1551_v34  ;;  %v2308_v35 = vpop.f32.mrb[66].mxu1 }
 0x9a0   :  { %v2871_v39 = vadd.f32 %v1616_v32, %v2641_v4  ;;  %v1617_v40 = vmul.f32 0.8, %v2308_v35  ;;  %v1554_v26 = vpop.f32.mrb[67].mxu1 }
 0x9a1   :  { %v2874_v28 = vadd.f32 %v1614_v33, %v2647_v8  ;;  %v1615_v44 = vmul.f32 0.8, %v1554_v26 }
 0x9a2   :  { %v2877_v47 = vadd.f32 %v1617_v40, %v2638_v1  ;;  %v1655_v49 = vmul.f32 %v2868_v37, %v2871_v39 }
 0x9a3   :  { %v2882_v54 = vadd.f32 %v1615_v44, %v2644_v7  ;;  %v1653_v41 = vmul.f32 %v2868_v37, %v2874_v28 }
 0x9a4   :  { %v1675_v4 = vsel %vm56_vm0, %v1655_v49, 0.0  ;;  %v1656_v62 = vmul.f32 %v2868_v37, %v2877_v47 }
 0x9a5   :  { %1676 = vadd.xlane.f32.xlu1 %v1675_v4  ;;  %v2311_v8 = vpop.f32.mrb[68].mxu1  ;;  %v1669_v63 = vsel %vm56_vm0, %v1653_v41, 0.0  ;;  %v1654_v1 = vmul.f32 %v2868_v37, %v2882_v54 }
 0x9a6   :  { %v1620_v43 = vmul.f32 0.8, %v2311_v8  ;;  %1670 = vadd.xlane.f32.xlu0 %v1669_v63  ;;  %v1567_v0 = vpop.f32.mrb[69].mxu1  ;;  %v1678_v38 = vsel %vm56_vm0, %v1656_v62, 0.0 }
 0x9a7   :  { %v1618_v7 = vmul.f32 0.8, %v1567_v0  ;;  %v2312_v2 = vpop.f32.mrb[70].mxu1  ;;  %v1672_v12 = vsel %vm56_vm0, %v1654_v1, 0.0 }
 0x9a8   :  { %v2893_v3 = vadd.f32 %v1620_v43, %v2657_v23  ;;  %v1621_v5 = vmul.f32 0.8, %v2312_v2  ;;  %v1570_v36 = vpop.f32.mrb[71].mxu1 }
 0x9a9   :  { %v2897_v9 = vadd.f32 %v1618_v7, %v2663_v29  ;;  %v1619_v11 = vmul.f32 0.8, %v1570_v36  ;;  %1679 = vadd.xlane.f32.xlu1 %v1678_v38 }
 0x9aa   :  { %v2901_v17 = vadd.f32 %v1621_v5, %v2654_v16  ;;  %1673 = vadd.xlane.f32.xlu0 %v1672_v12  ;;  %v1659_v51 = vmul.f32 %v2868_v37, %v2893_v3 }
 0x9ab   :  { %v2906_v23 = vadd.f32 %v1619_v11, %v2660_v27  ;;  %v1657_v53 = vmul.f32 %v2868_v37, %v2897_v9 }
 0x9ac   :  { %v1687_v19 = vsel %vm56_vm0, %v1659_v51, 0.0  ;;  %v1660_v29 = vmul.f32 %v2868_v37, %v2901_v17 }
 0x9ad   :  { %v2315_v20 = vpop.f32.mrb[72].mxu1  ;;  %v1658_v22 = vmul.f32 %v2868_v37, %v2906_v23  ;;  %v1681_v56 = vsel %vm56_vm0, %v1657_v53, 0.0 }
 0x9ae   :  { %v1624_v21 = vmul.f32 0.8, %v2315_v20  ;;  %1688 = vadd.xlane.f32.xlu0 %v1687_v19  ;;  %v1583_v16 = vpop.f32.mrb[73].mxu1  ;;  %v1690_v13 = vsel %vm56_vm0, %v1660_v29, 0.0 }
 0x9af   :  { %v1622_v46 = vmul.f32 0.8, %v1583_v16  ;;  %1691 = vadd.xlane.f32.xlu1 %v1690_v13  ;;  %v2316_v27 = vpop.f32.mrb[74].mxu1  ;;  %v1684_v58 = vsel %vm56_vm0, %v1658_v22, 0.0 }
 0x9b0   :  { %v2917_v48 = vadd.f32 %v1624_v21, %v2673_v45  ;;  %v1625_v18 = vmul.f32 0.8, %v2316_v27  ;;  %v1586_v24 = vpop.f32.mrb[75].mxu1 }
 0x9b1   :  { %v2920_v25 = vadd.f32 %v1622_v46, %v2679_v52  ;;  %v1623_v55 = vmul.f32 0.8, %v1586_v24 }
 0x9b2   :  { %v2924_v57 = vadd.f32 %v1625_v18, %v2670_v42  ;;  %1682 = vadd.xlane.f32.xlu0 %v1681_v56  ;;  %v1663_v59 = vmul.f32 %v2868_v37, %v2917_v48 }
 0x9b3   :  { %v2930_v45 = vadd.f32 %v1623_v55, %v2676_v50  ;;  %1685 = vadd.xlane.f32.xlu1 %v1684_v58  ;;  %v1661_v42 = vmul.f32 %v2868_v37, %v2920_v25 }
 0x9b4   :  { %v1699_v30 = vsel %vm56_vm0, %v1663_v59, 0.0  ;;  %v1664_v52 = vmul.f32 %v2868_v37, %v2924_v57 }
 0x9b5   :  { %v2319_v60 = vpop.f32.mrb[76].mxu1  ;;  %v1662_v34 = vmul.f32 %v2868_v37, %v2930_v45  ;;  %v1693_v41 = vsel %vm56_vm0, %v1661_v42, 0.0 }
 0x9b6   :  { %v1628_v31 = vmul.f32 0.8, %v2319_v60  ;;  %1700 = vadd.xlane.f32.xlu0 %v1699_v30  ;;  %v1599_v61 = vpop.f32.mrb[77].mxu1  ;;  %v1702_v32 = vsel %vm56_vm0, %v1664_v52, 0.0 }
 0x9b7   :  { %v1626_v50 = vmul.f32 0.8, %v1599_v61  ;;  %1703 = vadd.xlane.f32.xlu1 %v1702_v32  ;;  %v2320_v33 = vpop.f32.mrb[78].mxu1  ;;  %v1696_v4 = vsel %vm56_vm0, %v1662_v34, 0.0 }
 0x9b8   :  { %v1629_v35 = vmul.f32 0.8, %v2320_v33  ;;  %v1602_v40 = vpop.f32.mrb[79].mxu1  ;;  %v2941_v26 = vadd.f32 %v1628_v31, %v2689_v10 }
 0x9b9   :  { %v2944_v44 = vadd.f32 %v1626_v50, %v2695_v15  ;;  %v1627_v49 = vmul.f32 0.8, %v1602_v40 }
 0x9ba   :  { %1694 = vadd.xlane.f32.xlu0 %v1693_v41  ;;  %v2949_v62 = vadd.f32 %v1629_v35, %v2686_v6  ;;  %v1667_v1 = vmul.f32 %v2868_v37, %v2941_v26 }
 0x9bb   :  { %v2952_v8 = vadd.f32 %v1627_v49, %v2692_v14  ;;  %1697 = vadd.xlane.f32.xlu1 %v1696_v4  ;;  %v1665_v10 = vmul.f32 %v2868_v37, %v2944_v44 }
 0x9bc   :  { %v1668_v6 = vmul.f32 %v2868_v37, %v2949_v62  ;;  %v1711_v14 = vsel %vm56_vm0, %v1667_v1, 0.0 }
 0x9bd   :  { %v1705_v63 = vsel %vm56_vm0, %v1665_v10, 0.0  ;;  %v1666_v15 = vmul.f32 %v2868_v37, %v2952_v8 }
 0x9be   :  { %1706 = vadd.xlane.f32.xlu0 %v1705_v63  ;;  %v1714_v0 = vsel %vm56_vm0, %v1668_v6, 0.0 }
 0x9bf   :  { %v1708_v43 = vsel %vm56_vm0, %v1666_v15, 0.0 }
 0x9c0   :  { %1709 = vadd.xlane.f32.xlu1 %v1708_v43 }
 0x9c2   :  { %1712 = vadd.xlane.f32.xlu0 %v1711_v14 }
 0x9c4   :  { %1715 = vadd.xlane.f32.xlu1 %v1714_v0 }
 0xa32   :  { %v1677_v7 = vpop.xlane.xlu1 %1676 }
 0xa33   :  { %2345 = vtanh.f32 %v1677_v7  ;;  %v1671_v2 = vpop.xlane.xlu0 %1670 }
 0xa34   :  { %2347 = vtanh.f32 %v1671_v2 }
 0xa36   :  { %v1680_v5 = vpop.xlane.xlu1 %1679 }
 0xa37   :  { %2349 = vtanh.f32 %v1680_v5  ;;  %v1674_v36 = vpop.xlane.xlu0 %1673 }
 0xa38   :  { %2351 = vtanh.f32 %v1674_v36 }
 0xa3b   :  { %v1689_v38 = vpop.xlane.xlu0 %1688 }
 0xa3c   :  { %2353 = vtanh.f32 %v1689_v38  ;;  %v1692_v11 = vpop.xlane.xlu1 %1691 }
 0xa3d   :  { %v2346_v37 = vpop.eup %2345  ;;  %2355 = vtanh.f32 %v1692_v11 }
 0xa3e   :  { %v2348_v12 = vpop.eup %2347  ;;  %v1735_v51 = vmul.f32 %v2346_v37, %v2871_v39  ;;  %1768 = vst.msk [vmem:[%s3117_s8 + $0x10] sm:$0xff] %vm1765_vm1, %v2346_v37 }
 0xa3f   :  { %v1733_v19 = vmul.f32 %v2348_v12, %v2874_v28  ;;  %1766 = vst.msk [vmem:[%s3117_s8] sm:$0xff] %vm1765_vm1, %v2348_v12  ;;  %v1683_v29 = vpop.xlane.xlu0 %1682 }
 0xa40   :  { %1751 = vst.msk [vmem:[%s3118_s7 + $0x10] sm:$0xff] %vm56_vm0, %v1735_v51  ;;  %2357 = vtanh.f32 %v1683_v29  ;;  %v1686_v39 = vpop.xlane.xlu1 %1685 }
 0xa41   :  { %v2350_v20 = vpop.eup %2349  ;;  %1749 = vst.msk [vmem:[%s3118_s7] sm:$0xff] %vm56_vm0, %v1733_v19  ;;  %2359 = vtanh.f32 %v1686_v39 }
 0xa42   :  { %v2352_v28 = vpop.eup %2351  ;;  %v1736_v53 = vmul.f32 %v2350_v20, %v2877_v47  ;;  %1769 = vst.msk [vmem:[%s3117_s8 + $0x18] sm:$0xff] %vm1765_vm1, %v2350_v20 }
 0xa43   :  { %v1734_v21 = vmul.f32 %v2352_v28, %v2882_v54  ;;  %1767 = vst.msk [vmem:[%s3117_s8 + $0x8] sm:$0xff] %vm1765_vm1, %v2352_v28  ;;  %v1701_v16 = vpop.xlane.xlu0 %1700 }
 0xa44   :  { %1752 = vst.msk [vmem:[%s3118_s7 + $0x18] sm:$0xff] %vm56_vm0, %v1736_v53  ;;  %2361 = vtanh.f32 %v1701_v16  ;;  %v1704_v47 = vpop.xlane.xlu1 %1703 }
 0xa45   :  { %1750 = vst.msk [vmem:[%s3118_s7 + $0x8] sm:$0xff] %vm56_vm0, %v1734_v21  ;;  %2363 = vtanh.f32 %v1704_v47 }
 0xa46   :  { %v2354_v54 = vpop.eup %2353 }
 0xa47   :  { %v2356_v13 = vpop.eup %2355  ;;  %v1739_v22 = vmul.f32 %v2354_v54, %v2893_v3  ;;  %1772 = vst.msk [vmem:[%s3117_s8 + $0x30] sm:$0xff] %vm1765_vm1, %v2354_v54  ;;  %v1695_v46 = vpop.xlane.xlu0 %1694 }
 0xa48   :  { %v1740_v27 = vmul.f32 %v2356_v13, %v2901_v17  ;;  %1773 = vst.msk [vmem:[%s3117_s8 + $0x38] sm:$0xff] %vm1765_vm1, %v2356_v13  ;;  %2365 = vtanh.f32 %v1695_v46  ;;  %v1698_v18 = vpop.xlane.xlu1 %1697 }
 0xa49   :  { %1755 = vst.msk [vmem:[%s3118_s7 + $0x30] sm:$0xff] %vm56_vm0, %v1739_v22  ;;  %2367 = vtanh.f32 %v1698_v18 }
 0xa4a   :  { %v2358_v3 = vpop.eup %2357  ;;  %1756 = vst.msk [vmem:[%s3118_s7 + $0x38] sm:$0xff] %vm56_vm0, %v1740_v27 }
 0xa4b   :  { %v2360_v17 = vpop.eup %2359  ;;  %v1737_v24 = vmul.f32 %v2358_v3, %v2897_v9  ;;  %1770 = vst.msk [vmem:[%s3117_s8 + $0x20] sm:$0xff] %vm1765_vm1, %v2358_v3  ;;  %v1707_v55 = vpop.xlane.xlu0 %1706 }
 0xa4c   :  { %v1738_v56 = vmul.f32 %v2360_v17, %v2906_v23  ;;  %1771 = vst.msk [vmem:[%s3117_s8 + $0x28] sm:$0xff] %vm1765_vm1, %v2360_v17  ;;  %2369 = vtanh.f32 %v1707_v55 }
 0xa4d   :  { %1753 = vst.msk [vmem:[%s3118_s7 + $0x20] sm:$0xff] %vm56_vm0, %v1737_v24  ;;  %v1710_v9 = vpop.xlane.xlu1 %1709 }
 0xa4e   :  { %v2362_v58 = vpop.eup %2361  ;;  %1754 = vst.msk [vmem:[%s3118_s7 + $0x28] sm:$0xff] %vm56_vm0, %v1738_v56  ;;  %2371 = vtanh.f32 %v1710_v9 }
 0xa4f   :  { %v2364_v23 = vpop.eup %2363  ;;  %v1743_v59 = vmul.f32 %v2362_v58, %v2917_v48  ;;  %1776 = vst.msk [vmem:[%s3117_s8 + $0x50] sm:$0xff] %vm1765_vm1, %v2362_v58  ;;  %v1713_v30 = vpop.xlane.xlu0 %1712 }
 0xa50   :  { %v1744_v52 = vmul.f32 %v2364_v23, %v2924_v57  ;;  %1777 = vst.msk [vmem:[%s3117_s8 + $0x58] sm:$0xff] %vm1765_vm1, %v2364_v23  ;;  %2373 = vtanh.f32 %v1713_v30 }
 0xa51   :  { %1759 = vst.msk [vmem:[%s3118_s7 + $0x50] sm:$0xff] %vm56_vm0, %v1743_v59  ;;  %v1716_v48 = vpop.xlane.xlu1 %1715 }
 0xa52   :  { %v2366_v60 = vpop.eup %2365  ;;  %1760 = vst.msk [vmem:[%s3118_s7 + $0x58] sm:$0xff] %vm56_vm0, %v1744_v52  ;;  %2375 = vtanh.f32 %v1716_v48 }
 0xa53   :  { %v2368_v57 = vpop.eup %2367  ;;  %v1741_v42 = vmul.f32 %v2366_v60, %v2920_v25  ;;  %1774 = vst.msk [vmem:[%s3117_s8 + $0x40] sm:$0xff] %vm1765_vm1, %v2366_v60 }
 0xa54   :  { %v1742_v31 = vmul.f32 %v2368_v57, %v2930_v45  ;;  %1775 = vst.msk [vmem:[%s3117_s8 + $0x48] sm:$0xff] %vm1765_vm1, %v2368_v57 }
 0xa55   :  { %1757 = vst.msk [vmem:[%s3118_s7 + $0x40] sm:$0xff] %vm56_vm0, %v1741_v42 }
 0xa56   :  { %v2370_v61 = vpop.eup %2369  ;;  %1758 = vst.msk [vmem:[%s3118_s7 + $0x48] sm:$0xff] %vm56_vm0, %v1742_v31 }
 0xa57   :  { %v1745_v25 = vmul.f32 %v2370_v61, %v2944_v44  ;;  %1778 = vst.msk [vmem:[%s3117_s8 + $0x60] sm:$0xff] %vm1765_vm1, %v2370_v61 }
 0xa58   :  { %v2372_v45 = vpop.eup %2371 }
 0xa59   :  { %1761 = vst.msk [vmem:[%s3118_s7 + $0x60] sm:$0xff] %vm56_vm0, %v1745_v25  ;;  %v1746_v32 = vmul.f32 %v2372_v45, %v2952_v8 }
 0xa5a   :  { %1779 = vst.msk [vmem:[%s3117_s8 + $0x68] sm:$0xff] %vm1765_vm1, %v2372_v45  ;;  %v2374_v34 = vpop.eup %2373 }
 0xa5b   :  { %1762 = vst.msk [vmem:[%s3118_s7 + $0x68] sm:$0xff] %vm56_vm0, %v1746_v32  ;;  %v1747_v50 = vmul.f32 %v2374_v34, %v2941_v26 }
 0xa5c   :  { %1780 = vst.msk [vmem:[%s3117_s8 + $0x70] sm:$0xff] %vm1765_vm1, %v2374_v34  ;;  %v2376_v33 = vpop.eup %2375 }
 0xa5d   :  { %1763 = vst.msk [vmem:[%s3118_s7 + $0x70] sm:$0xff] %vm56_vm0, %v1747_v50  ;;  %v1748_v35 = vmul.f32 %v2376_v33, %v2949_v62 }
 0xa5e   :  { %1781 = vst.msk [vmem:[%s3117_s8 + $0x78] sm:$0xff] %vm1765_vm1, %v2376_v33 }
 0xa5f   :  { %1764 = vst.msk [vmem:[%s3118_s7 + $0x78] sm:$0xff] %vm56_vm0, %v1748_v35 }

</bundles_post_ra>
